<compile_context>
chip_gen: v7x
topology: tpu7x:2x2x1
jax: 0.10.0
libtpu: 0.0.40
codegen_flags: <defaults>
</compile_context>

<pallas_src>
import functools
import math

import jax
import jax.numpy as jnp
from jax import lax
from jax.experimental import pallas as pl
from jax.experimental.pallas import tpu as pltpu


def _round_up(x, m):
    return ((x + m - 1) // m) * m


def _supcon_kernel(q_ref, c_ref, gr_ref, gc_ref, out_ref,
                   m_scr, e_scr, p_scr, sr_scr, *, tile_q, tile_k, num_pad):
    """One (row-tile i, col-tile k) step of the online-softmax SupCon reduction."""
    i = pl.program_id(0)              # anchor (row) tile   -- "parallel"
    k = pl.program_id(1)              # contrast (col) tile -- "arbitrary" (reduction)

    @pl.when(k == 0)
    def _init():
        m_scr[...] = jnp.full_like(m_scr, -jnp.inf)
        e_scr[...] = jnp.zeros_like(e_scr)
        p_scr[...] = jnp.zeros_like(p_scr)
        sr_scr[...] = jnp.zeros_like(sr_scr)

    # Both tiles are bf16 with sqrt(1/T) folded in on the HBM side, so the MXU matmul
    # (f32 accumulation, contracting on the feature dim -> no transposed copy) directly
    # yields temperature-scaled logits; no per-step VPU scale or cast passes.
    s = lax.dot_general(q_ref[...], c_ref[...], (((1,), (1,)), ((), ())),
                        preferred_element_type=jnp.float32)           # [Tq, Tk]

    gr = gr_ref[...]                                                  # [Tq, 1] int32 ids
    gc = gc_ref[...]                                                  # [1, Tk] int32 ids
    pos = gr == gc                                                    # [Tq, Tk] bool

    # Online row max over ALL columns (self-contrast included), like the reference.
    # Padded contrast columns have all-zero features -> logits exactly 0, which never
    # exceeds the (non-negative) self-similarity, so no padding bias is needed here.
    m_prev = m_scr[...]
    m_new = jnp.maximum(m_prev, jnp.max(s, axis=1, keepdims=True))
    rescale = jnp.exp(m_prev - m_new)
    m_scr[...] = m_new

    row0 = i * tile_q
    col0 = k * tile_k
    on_diag = jnp.logical_and(row0 < col0 + tile_k, col0 < row0 + tile_q)

    @pl.when(jnp.logical_not(on_diag))
    def _off_diag():
        # Common case: no self-contrast element in this tile -> no exclusion work.
        e_scr[...] = e_scr[...] * rescale + jnp.sum(
            jnp.exp(s - m_new), axis=1, keepdims=True)
        p_scr[...] = p_scr[...] + jnp.sum(
            pos.astype(jnp.float32), axis=1, keepdims=True)
        sr_scr[...] = sr_scr[...] + jnp.sum(
            jnp.where(pos, s, 0.0), axis=1, keepdims=True)

    @pl.when(on_diag)
    def _diag():
        # Only tiles straddling the global diagonal pay for self-exclusion (selects
        # folded into the same reductions -- no extra row reduction, no eye matrix).
        r_glob = row0 + lax.broadcasted_iota(jnp.int32, s.shape, 0)
        c_glob = col0 + lax.broadcasted_iota(jnp.int32, s.shape, 1)
        not_self = r_glob != c_glob
        e_scr[...] = e_scr[...] * rescale + jnp.sum(
            jnp.where(not_self, jnp.exp(s - m_new), 0.0), axis=1, keepdims=True)
        pe = jnp.logical_and(pos, not_self)
        p_scr[...] = p_scr[...] + jnp.sum(
            pe.astype(jnp.float32), axis=1, keepdims=True)
        sr_scr[...] = sr_scr[...] + jnp.sum(
            jnp.where(pe, s, 0.0), axis=1, keepdims=True)

    # Finalize: per-anchor mean log-prob over positives; 0 for anchors without
    # positives (numerator is 0 then) and for padded anchor rows.
    @pl.when(k == pl.num_programs(1) - 1)
    def _final():
        m = m_scr[...]
        e = e_scr[...]
        if num_pad > 0:
            # Each padded contrast column contributed exactly exp(0 - m) to the
            # running exp-sum; remove them analytically instead of masking per step.
            e = e - jnp.float32(num_pad) * jnp.exp(-m)
        e = jnp.maximum(e, 0.0)
        p = p_scr[...]
        num = sr_scr[...] - p * (m + jnp.log(e + 1e-7))
        mlpp = num / (p + 1e-7)          # matches (mask*log_prob).sum / (mask.sum+1e-7)
        valid = (gr >= 0).astype(jnp.float32)
        # TODO(synk): a (1, Tq) lane-dense output block would avoid the masked (Tq, 1)
        # store; skipped since the store happens only once per row tile.
        out_ref[...] = mlpp * valid


def supcon_loss(features, labels=None, mask=None, *, temperature=0.07,
                contrast_mode='all', base_temperature=0.07,
                tile_q=None, tile_k=None, contrast_buffers=2):
    """JAX/Pallas port of SupConLoss.forward (contrast_mode='all')."""
    if features.ndim < 3:
        raise ValueError('`features` needs to be [bsz, n_views, ...]')
    if features.ndim > 3:
        features = features.reshape(features.shape[0], features.shape[1], -1)

    bsz, n_views, feat_dim = features.shape

    if labels is not None and mask is not None:
        raise ValueError('Cannot define both `labels` and `mask`')
    if mask is not None:
        # TODO(synk): arbitrary user-supplied [bsz, bsz] masks are not expressible as
        # per-sample group ids; only `labels` / SimCLR (both None) are wired in.
        raise NotImplementedError('explicit `mask` not supported by the Pallas kernel')
    if labels is None:
        gid = jnp.arange(bsz, dtype=jnp.int32)                 # SimCLR: eye(bsz) mask
    else:
        labels = jnp.asarray(labels).reshape(-1)
        if labels.shape[0] != bsz:
            raise ValueError('Num of labels does not match num of features')
        # -1 is reserved for padding; real labels must be non-negative (best-effort
        # check, skipped when labels are traced).
        try:
            has_neg = int(jnp.min(labels)) < 0
        except Exception:
            has_neg = False
        if has_neg:
            raise ValueError('labels must be non-negative class ids (-1 is reserved)')
        gid = labels.astype(jnp.int32)

    if contrast_mode == 'one':
        # TODO(synk): 'one' mode (single-view anchors) not wired into the tiled kernel.
        raise NotImplementedError("contrast_mode='one' not implemented in Pallas kernel")
    if contrast_mode != 'all':
        raise ValueError('Unknown mode: {}'.format(contrast_mode))

    n = bsz * n_views
    # torch.cat(torch.unbind(features, dim=1), dim=0) -> view-major [n_views*bsz, D].
    cf = jnp.transpose(features, (1, 0, 2)).reshape(n, feat_dim).astype(jnp.float32)
    gid_full = jnp.tile(gid, n_views)

    d_pad = _round_up(feat_dim, 128)
    n128 = _round_up(n, 128)

    # ---- tile selection -------------------------------------------------------
    if tile_q is None:
        tq = min(1024, n128)
        # Keep extra padding (beyond the mandatory 128 alignment) below ~25%.
        while tq > 128 and _round_up(n, tq) - n128 > n128 // 4:
            tq = _round_up(tq // 2, 128)
        # Prefer >= 2 row tiles so the "parallel" axis can occupy both TensorCores
        # on megacore parts (v7x).
        if _round_up(n, tq) // tq < 2 and tq > 128:
            tq = _round_up(tq // 2, 128)
    else:
        tq = int(tile_q)
    if tile_k is None:
        tk = 512 if tq % 512 == 0 else (256 if tq % 256 == 0 else 128)
    else:
        tk = int(tile_k)
    tk = min(tk, tq)
    if tq % 128 or tk % 128:
        raise ValueError('tile sizes must be multiples of 128')

    # ---- VMEM budget (v7x has only 64 MiB per TensorCore) ----------------------
    try:
        vmem_cap = int(pltpu.get_tpu_info().vmem_capacity_bytes)
    except Exception:
        vmem_cap = 64 * 1024 * 1024            # conservative (v7x) fallback
    cbuf = max(2, int(contrast_buffers))

    def _vmem_est(tq_, tk_):
        return (2 * tq_ * d_pad * 2            # anchor tile, double buffered, bf16
                + cbuf * tk_ * d_pad * 2       # contrast tile buffers, bf16
                + 8 * tq_ * tk_ * 4            # f32 logits + elementwise temporaries
                + 16 * tq_ * 4 + 2 * tk_ * 4)  # gid / out / accumulator refs

    budget = max(16 * 1024 * 1024, vmem_cap - 8 * 1024 * 1024)
    while _vmem_est(tq, tk) > budget and (tq > 128 or tk > 128):
        if tq > tk or tk <= 128:
            tq = max(128, _round_up(tq // 2, 128))
        else:
            tk = max(128, tk // 2)
        tk = min(tk, tq)
        if tq % tk:
            tk = 128

    n_pad = _round_up(n, tq * tk // math.gcd(tq, tk))     # lcm(tq, tk)
    num_pad = n_pad - n

    # bf16 on the HBM side halves the dominant contrast-tile DMA and per-tile VMEM,
    # and folding sqrt(1/T) into both operands removes every per-step scale/cast
    # (the MXU still accumulates in f32).  For tighter f32 parity with the PyTorch
    # reference, apply 1/T to the f32 matmul result instead (one Tq x Tk pass/step).
    scale = float(1.0 / temperature) ** 0.5
    feat = (cf * scale).astype(jnp.bfloat16)
    feat = jnp.pad(feat, ((0, n_pad - n), (0, d_pad - feat_dim)))
    gid_pad = jnp.pad(gid_full, (0, n_pad - n), constant_values=-1)
    gid_row = gid_pad.reshape(n_pad, 1)
    gid_col = gid_pad.reshape(1, n_pad)

    grid = (n_pad // tq, n_pad // tk)
    kernel = functools.partial(_supcon_kernel, tile_q=tq, tile_k=tk,
                               num_pad=int(num_pad))

    c_spec_kwargs = {}
    if cbuf != 2:
        # Optional deeper pipelining of the contrast stream (useful on v5e's lower
        # HBM bandwidth); default double-buffering is used otherwise.
        c_spec_kwargs['pipeline_mode'] = pl.Buffered(cbuf)

    vmem_limit = int(min(vmem_cap - 4 * 1024 * 1024,
                         max(32 * 1024 * 1024, 2 * _vmem_est(tq, tk))))

    per_row = pl.pallas_call(
        kernel,
        out_shape=jax.ShapeDtypeStruct((n_pad, 1), jnp.float32),
        grid_spec=pltpu.PrefetchScalarGridSpec(
            num_scalar_prefetch=0,
            grid=grid,
            in_specs=[
                pl.BlockSpec((tq, d_pad), lambda i, k: (i, 0)),     # anchor rows (resident over k)
                pl.BlockSpec((tk, d_pad), lambda i, k: (k, 0), **c_spec_kwargs),
                pl.BlockSpec((tq, 1), lambda i, k: (i, 0)),         # row group ids
                pl.BlockSpec((1, tk), lambda i, k: (0, k)),         # col group ids
            ],
            out_specs=pl.BlockSpec((tq, 1), lambda i, k: (i, 0)),
            scratch_shapes=[pltpu.VMEM((tq, 1), jnp.float32)] * 4,
        ),
        compiler_params=pltpu.CompilerParams(
            dimension_semantics=("parallel", "arbitrary"),
            vmem_limit_bytes=vmem_limit,
        ),
        cost_estimate=pl.CostEstimate(
            flops=int(2 * n_pad * n_pad * d_pad),
            transcendentals=int(n_pad * n_pad),
            bytes_accessed=int((n_pad // tq) * n_pad * d_pad * 2    # contrast stream (bf16)
                               + n_pad * d_pad * 2                  # anchor stream (bf16)
                               + (n_pad // tq) * n_pad * 4          # col gid re-stream
                               + 3 * n_pad * 4),
        ),
    )(feat, feat, gid_row, gid_col)

    # loss.view(anchor_count, batch_size).mean() == mean over all n anchors.
    return -(temperature / base_temperature) * (jnp.sum(per_row) / n)


def _supcon_loss_ref(features, labels=None, *, temperature=0.07, base_temperature=0.07):
    """Pure-JAX f32 reference (mirrors the PyTorch code) for sanity checking."""
    bsz, n_views = features.shape[0], features.shape[1]
    features = features.reshape(bsz, n_views, -1)
    if labels is None:
        mask = jnp.eye(bsz, dtype=jnp.float32)
    else:
        labels = labels.reshape(-1, 1)
        mask = (labels == labels.T).astype(jnp.float32)
    cf = jnp.transpose(features, (1, 0, 2)).reshape(bsz * n_views, -1).astype(jnp.float32)
    logits = cf @ cf.T / temperature
    logits = logits - jnp.max(logits, axis=1, keepdims=True)
    N = bsz * n_views
    mask = jnp.tile(mask, (n_views, n_views))
    logits_mask = 1.0 - jnp.eye(N, dtype=jnp.float32)
    mask = mask * logits_mask
    exp_logits = jnp.exp(logits) * logits_mask
    log_prob = logits - jnp.log(exp_logits.sum(1, keepdims=True) + 1e-7)
    mean_log_prob_pos = (mask * log_prob).sum(1) / (mask.sum(1) + 1e-7)
    return jnp.mean(-(temperature / base_temperature) * mean_log_prob_pos)


if __name__ == "__main__":
    key = jax.random.PRNGKey(0)
    bsz, n_views, feat_dim = 8, 2, 32

    kf, _ = jax.random.split(key)
    feats = jax.random.normal(kf, (bsz, n_views, feat_dim), dtype=jnp.float32)
    # SupCon expects (approximately) L2-normalized features.
    feats = feats / jnp.linalg.norm(feats, axis=-1, keepdims=True)
    labels = jnp.array([0, 1, 2, 0, 1, 2, 0, 1], dtype=jnp.int32)

    # Supervised path.
    loss = supcon_loss(feats, labels=labels, temperature=0.07,
                       contrast_mode='all', base_temperature=0.07)
    loss = jax.block_until_ready(loss)
    ref = _supcon_loss_ref(feats, labels, temperature=0.07, base_temperature=0.07)
    # bf16 MXU inputs with f32 accumulation -> tolerance-level agreement only.
    assert jnp.allclose(loss, ref, rtol=5e-2, atol=5e-2), (loss, ref)

    # Unsupervised (SimCLR) path: labels=None -> identity mask.
    loss_u = supcon_loss(feats, temperature=0.07, base_temperature=0.07)
    loss_u = jax.block_until_ready(loss_u)
    ref_u = _supcon_loss_ref(feats, None, temperature=0.07, base_temperature=0.07)
    assert jnp.allclose(loss_u, ref_u, rtol=5e-2, atol=5e-2), (loss_u, ref_u)

    print("KERNEL_OK")
</pallas_src>

<mosaic_0001>
module attributes {stable_mosaic.version = 11 : i64} {
  func.func @_supcon_kernel(%arg0: i32, %arg1: i32, %arg2: memref<128x128xbf16, #tpu.memory_space<vmem>>, %arg3: memref<128x128xbf16, #tpu.memory_space<vmem>>, %arg4: memref<128x1xi32, #tpu.memory_space<vmem>>, %arg5: memref<1x128xi32, #tpu.memory_space<vmem>>, %arg6: memref<128x1xf32, #tpu.memory_space<vmem>>, %arg7: memref<128x1xf32, #tpu.memory_space<vmem>>, %arg8: memref<128x1xf32, #tpu.memory_space<vmem>>, %arg9: memref<128x1xf32, #tpu.memory_space<vmem>>, %arg10: memref<128x1xf32, #tpu.memory_space<vmem>>) attributes {dimension_semantics = [#tpu.dimension_semantics<parallel>, #tpu.dimension_semantics<arbitrary>], iteration_bounds = array<i64: 1, 1>, scalar_prefetch = 0 : i64, scratch_operands = 4 : i64, tpu.core_type = #tpu.core_type<tc>, window_params = [{transform_indices = @transform_0, window_bounds = array<i64: 128, 128>}, {transform_indices = @transform_1, window_bounds = array<i64: 128, 128>}, {transform_indices = @transform_2, window_bounds = array<i64: 128, 1>}, {transform_indices = @transform_3, window_bounds = array<i64: 1, 128>}, {transform_indices = @transform_4, window_bounds = array<i64: 128, 1>}]} {
    %c0_i32 = arith.constant 0 : i32
    %0 = arith.cmpi eq, %arg1, %c0_i32 : i32
    %1 = arith.extui %0 : i1 to i32
    %c0_i32_0 = arith.constant 0 : i32
    %2 = arith.cmpi ne, %1, %c0_i32_0 : i32
    scf.if %2 {
      %cst_20 = arith.constant 0xFF800000 : f32
      %33 = vector.broadcast %cst_20 : f32 to vector<128x1xf32>
      %c0_21 = arith.constant 0 : index
      %c0_22 = arith.constant 0 : index
      %34 = vector.load %arg7[%c0_21, %c0_22] : memref<128x1xf32, #tpu.memory_space<vmem>>, vector<128x1xf32>
      tpu.vector_store %arg7[%c0_21, %c0_22], %33 {strides = array<i32>} : memref<128x1xf32, #tpu.memory_space<vmem>>, vector<128x1xf32>,
      %cst_23 = arith.constant 0.000000e+00 : f32
      %35 = vector.broadcast %cst_23 : f32 to vector<128x1xf32>
      %c0_24 = arith.constant 0 : index
      %c0_25 = arith.constant 0 : index
      %36 = vector.load %arg8[%c0_24, %c0_25] : memref<128x1xf32, #tpu.memory_space<vmem>>, vector<128x1xf32>
      tpu.vector_store %arg8[%c0_24, %c0_25], %35 {strides = array<i32>} : memref<128x1xf32, #tpu.memory_space<vmem>>, vector<128x1xf32>,
      %cst_26 = arith.constant 0.000000e+00 : f32
      %37 = vector.broadcast %cst_26 : f32 to vector<128x1xf32>
      %c0_27 = arith.constant 0 : index
      %c0_28 = arith.constant 0 : index
      %38 = vector.load %arg9[%c0_27, %c0_28] : memref<128x1xf32, #tpu.memory_space<vmem>>, vector<128x1xf32>
      tpu.vector_store %arg9[%c0_27, %c0_28], %37 {strides = array<i32>} : memref<128x1xf32, #tpu.memory_space<vmem>>, vector<128x1xf32>,
      %cst_29 = arith.constant 0.000000e+00 : f32
      %39 = vector.broadcast %cst_29 : f32 to vector<128x1xf32>
      %c0_30 = arith.constant 0 : index
      %c0_31 = arith.constant 0 : index
      %40 = vector.load %arg10[%c0_30, %c0_31] : memref<128x1xf32, #tpu.memory_space<vmem>>, vector<128x1xf32>
      tpu.vector_store %arg10[%c0_30, %c0_31], %39 {strides = array<i32>} : memref<128x1xf32, #tpu.memory_space<vmem>>, vector<128x1xf32>,
    } else {
    }
    %c0 = arith.constant 0 : index
    %c0_1 = arith.constant 0 : index
    %3 = vector.load %arg2[%c0, %c0_1] : memref<128x128xbf16, #tpu.memory_space<vmem>>, vector<128x128xbf16>
    %c0_2 = arith.constant 0 : index
    %c0_3 = arith.constant 0 : index
    %4 = vector.load %arg3[%c0_2, %c0_3] : memref<128x128xbf16, #tpu.memory_space<vmem>>, vector<128x128xbf16>
    %cst = arith.constant dense<0.000000e+00> : vector<128x128xf32>
    %5 = tpu.matmul %3, %4, %cst {dimension_numbers = #tpu.dot_dimension_numbers<[1], [1], [0], [0], [0, 0, 1, 0], [], []>} : vector<128x128xbf16>, vector<128x128xbf16>, vector<128x128xf32> -> vector<128x128xf32>
    %c0_4 = arith.constant 0 : index
    %c0_5 = arith.constant 0 : index
    %6 = vector.load %arg4[%c0_4, %c0_5] : memref<128x1xi32, #tpu.memory_space<vmem>>, vector<128x1xi32>
    %c0_6 = arith.constant 0 : index
    %c0_7 = arith.constant 0 : index
    %7 = vector.load %arg5[%c0_6, %c0_7] : memref<1x128xi32, #tpu.memory_space<vmem>>, vector<1x128xi32>
    %8 = vector.broadcast %6 : vector<128x1xi32> to vector<128x128xi32>
    %9 = vector.broadcast %7 : vector<1x128xi32> to vector<128x128xi32>
    %10 = arith.cmpi eq, %8, %9 : vector<128x128xi32>
    %c0_8 = arith.constant 0 : index
    %c0_9 = arith.constant 0 : index
    %11 = vector.load %arg7[%c0_8, %c0_9] : memref<128x1xf32, #tpu.memory_space<vmem>>, vector<128x1xf32>
    %cst_10 = arith.constant dense<0xFF800000> : vector<128xf32>
    %12 = vector.multi_reduction <maximumf>, %5, %cst_10 [1] : vector<128x128xf32> to vector<128xf32>
    %13 = vector.shape_cast %12 : vector<128xf32> to vector<128x1xf32>
    %14 = arith.maximumf %11, %13 : vector<128x1xf32>
    %15 = arith.subf %11, %14 : vector<128x1xf32>
    %16 = math.exp %15 : vector<128x1xf32>
    %c0_11 = arith.constant 0 : index
    %c0_12 = arith.constant 0 : index
    %17 = vector.load %arg7[%c0_11, %c0_12] : memref<128x1xf32, #tpu.memory_space<vmem>>, vector<128x1xf32>
    tpu.vector_store %arg7[%c0_11, %c0_12], %14 {strides = array<i32>} : memref<128x1xf32, #tpu.memory_space<vmem>>, vector<128x1xf32>,
    %c128_i32 = arith.constant 128 : i32
    %18 = arith.muli %arg0, %c128_i32 : i32
    %c128_i32_13 = arith.constant 128 : i32
    %19 = arith.muli %arg1, %c128_i32_13 : i32
    %c128_i32_14 = arith.constant 128 : i32
    %20 = arith.addi %19, %c128_i32_14 : i32
    %21 = arith.cmpi slt, %18, %20 : i32
    %c128_i32_15 = arith.constant 128 : i32
    %22 = arith.addi %18, %c128_i32_15 : i32
    %23 = arith.cmpi slt, %19, %22 : i32
    %24 = arith.andi %21, %23 : i1
    %true = arith.constant true
    %25 = arith.xori %24, %true : i1
    %26 = arith.extui %25 : i1 to i32
    %c0_i32_16 = arith.constant 0 : i32
    %27 = arith.cmpi ne, %26, %c0_i32_16 : i32
    scf.if %27 {
      %c0_20 = arith.constant 0 : index
      %c0_21 = arith.constant 0 : index
      %33 = vector.load %arg8[%c0_20, %c0_21] : memref<128x1xf32, #tpu.memory_space<vmem>>, vector<128x1xf32>
      %34 = arith.mulf %33, %16 : vector<128x1xf32>
      %35 = vector.broadcast %14 : vector<128x1xf32> to vector<128x128xf32>
      %36 = arith.subf %5, %35 : vector<128x128xf32>
      %37 = math.exp %36 : vector<128x128xf32>
      %cst_22 = arith.constant dense<0.000000e+00> : vector<128xf32>
      %38 = vector.multi_reduction <add>, %37, %cst_22 [1] : vector<128x128xf32> to vector<128xf32>
      %39 = vector.shape_cast %38 : vector<128xf32> to vector<128x1xf32>
      %40 = arith.addf %34, %39 : vector<128x1xf32>
      %c0_23 = arith.constant 0 : index
      %c0_24 = arith.constant 0 : index
      %41 = vector.load %arg8[%c0_23, %c0_24] : memref<128x1xf32, #tpu.memory_space<vmem>>, vector<128x1xf32>
      tpu.vector_store %arg8[%c0_23, %c0_24], %40 {strides = array<i32>} : memref<128x1xf32, #tpu.memory_space<vmem>>, vector<128x1xf32>,
      %c0_25 = arith.constant 0 : index
      %c0_26 = arith.constant 0 : index
      %42 = vector.load %arg9[%c0_25, %c0_26] : memref<128x1xf32, #tpu.memory_space<vmem>>, vector<128x1xf32>
      %43 = arith.extui %10 : vector<128x128xi1> to vector<128x128xi32>
      %44 = arith.sitofp %43 : vector<128x128xi32> to vector<128x128xf32>
      %cst_27 = arith.constant dense<0.000000e+00> : vector<128xf32>
      %45 = vector.multi_reduction <add>, %44, %cst_27 [1] : vector<128x128xf32> to vector<128xf32>
      %46 = vector.shape_cast %45 : vector<128xf32> to vector<128x1xf32>
      %47 = arith.addf %42, %46 : vector<128x1xf32>
      %c0_28 = arith.constant 0 : index
      %c0_29 = arith.constant 0 : index
      %48 = vector.load %arg9[%c0_28, %c0_29] : memref<128x1xf32, #tpu.memory_space<vmem>>, vector<128x1xf32>
      tpu.vector_store %arg9[%c0_28, %c0_29], %47 {strides = array<i32>} : memref<128x1xf32, #tpu.memory_space<vmem>>, vector<128x1xf32>,
      %c0_30 = arith.constant 0 : index
      %c0_31 = arith.constant 0 : index
      %49 = vector.load %arg10[%c0_30, %c0_31] : memref<128x1xf32, #tpu.memory_space<vmem>>, vector<128x1xf32>
      %cst_32 = arith.constant 0.000000e+00 : f32
      %50 = vector.broadcast %cst_32 : f32 to vector<128x128xf32>
      %51 = arith.select %10, %5, %50 : vector<128x128xi1>, vector<128x128xf32>
      %cst_33 = arith.constant dense<0.000000e+00> : vector<128xf32>
      %52 = vector.multi_reduction <add>, %51, %cst_33 [1] : vector<128x128xf32> to vector<128xf32>
      %53 = vector.shape_cast %52 : vector<128xf32> to vector<128x1xf32>
      %54 = arith.addf %49, %53 : vector<128x1xf32>
      %c0_34 = arith.constant 0 : index
      %c0_35 = arith.constant 0 : index
      %55 = vector.load %arg10[%c0_34, %c0_35] : memref<128x1xf32, #tpu.memory_space<vmem>>, vector<128x1xf32>
      tpu.vector_store %arg10[%c0_34, %c0_35], %54 {strides = array<i32>} : memref<128x1xf32, #tpu.memory_space<vmem>>, vector<128x1xf32>,
    } else {
    }
    %28 = arith.extui %24 : i1 to i32
    %c0_i32_17 = arith.constant 0 : i32
    %29 = arith.cmpi ne, %28, %c0_i32_17 : i32
    scf.if %29 {
      %33 = tpu.iota {dimensions = array<i32: 0>} : vector<128x128xi32>
      %34 = vector.broadcast %18 : i32 to vector<128x128xi32>
      %35 = arith.addi %34, %33 : vector<128x128xi32>
      %36 = tpu.iota {dimensions = array<i32: 1>} : vector<128x128xi32>
      %37 = vector.broadcast %19 : i32 to vector<128x128xi32>
      %38 = arith.addi %37, %36 : vector<128x128xi32>
      %39 = arith.cmpi ne, %35, %38 : vector<128x128xi32>
      %c0_20 = arith.constant 0 : index
      %c0_21 = arith.constant 0 : index
      %40 = vector.load %arg8[%c0_20, %c0_21] : memref<128x1xf32, #tpu.memory_space<vmem>>, vector<128x1xf32>
      %41 = arith.mulf %40, %16 : vector<128x1xf32>
      %42 = vector.broadcast %14 : vector<128x1xf32> to vector<128x128xf32>
      %43 = arith.subf %5, %42 : vector<128x128xf32>
      %44 = math.exp %43 : vector<128x128xf32>
      %cst_22 = arith.constant 0.000000e+00 : f32
      %45 = vector.broadcast %cst_22 : f32 to vector<128x128xf32>
      %46 = arith.select %39, %44, %45 : vector<128x128xi1>, vector<128x128xf32>
      %cst_23 = arith.constant dense<0.000000e+00> : vector<128xf32>
      %47 = vector.multi_reduction <add>, %46, %cst_23 [1] : vector<128x128xf32> to vector<128xf32>
      %48 = vector.shape_cast %47 : vector<128xf32> to vector<128x1xf32>
      %49 = arith.addf %41, %48 : vector<128x1xf32>
      %c0_24 = arith.constant 0 : index
      %c0_25 = arith.constant 0 : index
      %50 = vector.load %arg8[%c0_24, %c0_25] : memref<128x1xf32, #tpu.memory_space<vmem>>, vector<128x1xf32>
      tpu.vector_store %arg8[%c0_24, %c0_25], %49 {strides = array<i32>} : memref<128x1xf32, #tpu.memory_space<vmem>>, vector<128x1xf32>,
      %51 = arith.andi %10, %39 : vector<128x128xi1>
      %c0_26 = arith.constant 0 : index
      %c0_27 = arith.constant 0 : index
      %52 = vector.load %arg9[%c0_26, %c0_27] : memref<128x1xf32, #tpu.memory_space<vmem>>, vector<128x1xf32>
      %53 = arith.extui %51 : vector<128x128xi1> to vector<128x128xi32>
      %54 = arith.sitofp %53 : vector<128x128xi32> to vector<128x128xf32>
      %cst_28 = arith.constant dense<0.000000e+00> : vector<128xf32>
      %55 = vector.multi_reduction <add>, %54, %cst_28 [1] : vector<128x128xf32> to vector<128xf32>
      %56 = vector.shape_cast %55 : vector<128xf32> to vector<128x1xf32>
      %57 = arith.addf %52, %56 : vector<128x1xf32>
      %c0_29 = arith.constant 0 : index
      %c0_30 = arith.constant 0 : index
      %58 = vector.load %arg9[%c0_29, %c0_30] : memref<128x1xf32, #tpu.memory_space<vmem>>, vector<128x1xf32>
      tpu.vector_store %arg9[%c0_29, %c0_30], %57 {strides = array<i32>} : memref<128x1xf32, #tpu.memory_space<vmem>>, vector<128x1xf32>,
      %c0_31 = arith.constant 0 : index
      %c0_32 = arith.constant 0 : index
      %59 = vector.load %arg10[%c0_31, %c0_32] : memref<128x1xf32, #tpu.memory_space<vmem>>, vector<128x1xf32>
      %cst_33 = arith.constant 0.000000e+00 : f32
      %60 = vector.broadcast %cst_33 : f32 to vector<128x128xf32>
      %61 = arith.select %51, %5, %60 : vector<128x128xi1>, vector<128x128xf32>
      %cst_34 = arith.constant dense<0.000000e+00> : vector<128xf32>
      %62 = vector.multi_reduction <add>, %61, %cst_34 [1] : vector<128x128xf32> to vector<128xf32>
      %63 = vector.shape_cast %62 : vector<128xf32> to vector<128x1xf32>
      %64 = arith.addf %59, %63 : vector<128x1xf32>
      %c0_35 = arith.constant 0 : index
      %c0_36 = arith.constant 0 : index
      %65 = vector.load %arg10[%c0_35, %c0_36] : memref<128x1xf32, #tpu.memory_space<vmem>>, vector<128x1xf32>
      tpu.vector_store %arg10[%c0_35, %c0_36], %64 {strides = array<i32>} : memref<128x1xf32, #tpu.memory_space<vmem>>, vector<128x1xf32>,
    } else {
    }
    %c0_i32_18 = arith.constant 0 : i32
    %30 = arith.cmpi eq, %arg1, %c0_i32_18 : i32
    %31 = arith.extui %30 : i1 to i32
    %c0_i32_19 = arith.constant 0 : i32
    %32 = arith.cmpi ne, %31, %c0_i32_19 : i32
    scf.if %32 {
      %c0_20 = arith.constant 0 : index
      %c0_21 = arith.constant 0 : index
      %33 = vector.load %arg7[%c0_20, %c0_21] : memref<128x1xf32, #tpu.memory_space<vmem>>, vector<128x1xf32>
      %c0_22 = arith.constant 0 : index
      %c0_23 = arith.constant 0 : index
      %34 = vector.load %arg8[%c0_22, %c0_23] : memref<128x1xf32, #tpu.memory_space<vmem>>, vector<128x1xf32>
      %cst_24 = arith.constant 0.000000e+00 : f32
      %35 = vector.broadcast %cst_24 : f32 to vector<128x1xf32>
      %36 = arith.subf %35, %33 : vector<128x1xf32>
      %37 = math.exp %36 : vector<128x1xf32>
      %cst_25 = arith.constant 1.120000e+02 : f32
      %38 = vector.broadcast %cst_25 : f32 to vector<128x1xf32>
      %39 = arith.mulf %38, %37 : vector<128x1xf32>
      %40 = arith.subf %34, %39 : vector<128x1xf32>
      %cst_26 = arith.constant 0.000000e+00 : f32
      %41 = vector.broadcast %cst_26 : f32 to vector<128x1xf32>
      %42 = arith.maximumf %40, %41 : vector<128x1xf32>
      %c0_27 = arith.constant 0 : index
      %c0_28 = arith.constant 0 : index
      %43 = vector.load %arg9[%c0_27, %c0_28] : memref<128x1xf32, #tpu.memory_space<vmem>>, vector<128x1xf32>
      %c0_29 = arith.constant 0 : index
      %c0_30 = arith.constant 0 : index
      %44 = vector.load %arg10[%c0_29, %c0_30] : memref<128x1xf32, #tpu.memory_space<vmem>>, vector<128x1xf32>
      %cst_31 = arith.constant 1.000000e-07 : f32
      %45 = vector.broadcast %cst_31 : f32 to vector<128x1xf32>
      %46 = arith.addf %42, %45 : vector<128x1xf32>
      %47 = math.log %46 : vector<128x1xf32>
      %48 = arith.addf %33, %47 : vector<128x1xf32>
      %49 = arith.mulf %43, %48 : vector<128x1xf32>
      %50 = arith.subf %44, %49 : vector<128x1xf32>
      %cst_32 = arith.constant 1.000000e-07 : f32
      %51 = vector.broadcast %cst_32 : f32 to vector<128x1xf32>
      %52 = arith.addf %43, %51 : vector<128x1xf32>
      %53 = arith.divf %50, %52 : vector<128x1xf32>
      %c0_i32_33 = arith.constant 0 : i32
      %54 = vector.broadcast %c0_i32_33 : i32 to vector<128x1xi32>
      %55 = arith.cmpi sge, %6, %54 : vector<128x1xi32>
      %56 = arith.extui %55 : vector<128x1xi1> to vector<128x1xi32>
      %57 = arith.sitofp %56 : vector<128x1xi32> to vector<128x1xf32>
      %58 = arith.mulf %53, %57 : vector<128x1xf32>
      %c0_34 = arith.constant 0 : index
      %c0_35 = arith.constant 0 : index
      %59 = vector.load %arg6[%c0_34, %c0_35] : memref<128x1xf32, #tpu.memory_space<vmem>>, vector<128x1xf32>
      tpu.vector_store %arg6[%c0_34, %c0_35], %58 {strides = array<i32>} : memref<128x1xf32, #tpu.memory_space<vmem>>, vector<128x1xf32>,
    } else {
    }
    return
  }
  func.func @transform_0(%arg0: i32, %arg1: i32) -> (i32, i32) {
    %c0_i32 = arith.constant 0 : i32
    %c0_i32_0 = arith.constant 0 : i32
    return %arg0, %c0_i32 : i32, i32
  }
  func.func @transform_1(%arg0: i32, %arg1: i32) -> (i32, i32) {
    %c0_i32 = arith.constant 0 : i32
    %c0_i32_0 = arith.constant 0 : i32
    return %arg1, %c0_i32 : i32, i32
  }
  func.func @transform_2(%arg0: i32, %arg1: i32) -> (i32, i32) {
    %c0_i32 = arith.constant 0 : i32
    %c0_i32_0 = arith.constant 0 : i32
    return %arg0, %c0_i32 : i32, i32
  }
  func.func @transform_3(%arg0: i32, %arg1: i32) -> (i32, i32) {
    %c0_i32 = arith.constant 0 : i32
    %c0_i32_0 = arith.constant 0 : i32
    return %c0_i32, %arg1 : i32, i32
  }
  func.func @transform_4(%arg0: i32, %arg1: i32) -> (i32, i32) {
    %c0_i32 = arith.constant 0 : i32
    %c0_i32_0 = arith.constant 0 : i32
    return %arg0, %c0_i32 : i32, i32
  }
}

</mosaic_0001>

<bundles_post_ra>
// kernel: tpu_custom_call.1
= control target key start
LH: loop header
LB: loop body
LE: loop exit
PB: predicated region body
PF: predicated region fallthrough
CT: control target
= control target key end

     0   :  { %v2204_v1 = vmov 0   ;;  %vm3666_vm0 = vcmask 7168   ;;  %v2205_v28 = vmov -inf   ;;  %v3669_v29 = vmov 0.0   ;;  %s3654_s1 = inlined_call_operand.vmem [shape: bf16[128,128], index: 1, kind: input, shape index: {}]   ;;  %s3655_s0 = inlined_call_operand.vmem [shape: bf16[128,128], index: 0, kind: input, shape index: {}]   ;;  %s3656_s2 = inlined_call_operand.vmem [shape: s32[128,1], index: 2, kind: input, shape index: {}]   ;;  %s3657_s3 = inlined_call_operand.vmem [shape: s32[1,128], index: 3, kind: input, shape index: {}]   ;;  %s3658_s4 = inlined_call_operand.vmem [shape: f32[128,1], index: 4, kind: output, shape index: {}]  }
   0x1   :  { %v2014_v0 = vld [vmem:[%s3654_s1] sm:$0xff]   ;;  %2012 = vset.pattern.permute.xlu0 %v2204_v1  ;;  %2013 = vset.pattern.permute.xlu1 %v2204_v1  ;;  %v2015_v2 = vld [vmem:[%s3654_s1 + $0x8] sm:$0xff]   ;;  %v2016_v3 = vld [vmem:[%s3654_s1 + $0x10] sm:$0xff]   ;;  %25 = vst.msk [vmem:[#allocation2 + $0x10] sm:$0xff] %vm3666_vm0, %v2205_v28  ;;  %v536_v36 = vlaneseq  ;;  %v3731_v54 = vmov 0  ;;  %v3733_v56 = vmov 0 }
   0x2   :  { %1961 = vmatprep.subr.bf16.mxu0 %v2014_v0  ;;  %1993 = vmatprep.subr.bf16.mxu1 %v2014_v0  ;;  %v2022_v4 = vld [vmem:[%s3655_s0] sm:$0xff]   ;;  %v2017_v6 = vld [vmem:[%s3654_s1 + $0x18] sm:$0xff]   ;;  %v314_v8 = vld [vmem:[%s3656_s2 + $0x10] sm:$0xff]  ;;  %23 = vst.msk [vmem:[#allocation2] sm:$0xff] %vm3666_vm0, %v2205_v28 }
   0x3   :  { %1962 = vmatpush3.bf16.xpose.msra.mxu0 %v2014_v0  ;;  %2001 = vmatpush3.bf16.xpose.msra.mxu1 %v2014_v0  ;;  %v2024_v5 = vld [vmem:[%s3655_s0 + $0x20] sm:$0xff]   ;;  %v313_v9 = vld [vmem:[%s3656_s2 + $0x8] sm:$0xff]  ;;  %v315_v10 = vld [vmem:[%s3656_s2 + $0x18] sm:$0xff]  ;;  %24 = vst.msk [vmem:[#allocation2 + $0x8] sm:$0xff] %vm3666_vm0, %v2205_v28  ;;  %v2431_v38 = vshrl.u32 %v536_v36, 7  ;;  %v2435_v40 = vand.u32 127, %v536_v36 }
   0x4   :  { %1963 = vmatprep.subr.bf16.mxu0 %v2015_v2  ;;  %1994 = vmatprep.subr.bf16.mxu1 %v2015_v2  ;;  %v312_v7 = vld [vmem:[%s3656_s2] sm:$0xff]  ;;  %v317_v12 = vld [vmem:[%s3656_s2 + $0x28] sm:$0xff]  ;;  %v318_v14 = vld [vmem:[%s3656_s2 + $0x30] sm:$0xff]  ;;  %26 = vst.msk [vmem:[#allocation2 + $0x18] sm:$0xff] %vm3666_vm0, %v2205_v28 }
   0x5   :  { %1977 = vmatprep.mubr.bf16.mxu0 %v2022_v4  ;;  %1985 = vmatprep.mubr.bf16.mxu1 %v2024_v5  ;;  %v316_v11 = vld [vmem:[%s3656_s2 + $0x20] sm:$0xff]  ;;  %v319_v15 = vld [vmem:[%s3656_s2 + $0x38] sm:$0xff]  ;;  %v322_v17 = vld [vmem:[%s3656_s2 + $0x50] sm:$0xff]  ;;  %27 = vst.msk [vmem:[#allocation2 + $0x20] sm:$0xff] %vm3666_vm0, %v2205_v28  ;;  %v2438_v41 = vadd.s32 16, %v2431_v38  ;;  %v2446_v44 = vadd.s32 24, %v2431_v38  ;;  %vm3659_vm4 = vcmp.ne.s32.totalorder %v2431_v38, %v2435_v40 }
   0x6   :  { %330 = vperm.xlu0 %2012, %v312_v7   ;;  %336 = vperm.xlu1 %2013, %v314_v8   ;;  %v2018_v13 = vld [vmem:[%s3654_s1 + $0x20] sm:$0xff]   ;;  %v2019_v18 = vld [vmem:[%s3654_s1 + $0x28] sm:$0xff]   ;;  %v2020_v20 = vld [vmem:[%s3654_s1 + $0x30] sm:$0xff]   ;;  %28 = vst.msk [vmem:[#allocation2 + $0x28] sm:$0xff] %vm3666_vm0, %v2205_v28  ;;  %v2449_v45 = vadd.s32 80, %v2431_v38  ;;  %v2455_v47 = vadd.s32 64, %v2431_v38 }
   0x7   :  { %v320_v16 = vld [vmem:[%s3656_s2 + $0x40] sm:$0xff]  ;;  %v321_v19 = vld [vmem:[%s3656_s2 + $0x48] sm:$0xff]  ;;  %v2021_v21 = vld [vmem:[%s3654_s1 + $0x38] sm:$0xff]   ;;  %29 = vst.msk [vmem:[#allocation2 + $0x30] sm:$0xff] %vm3666_vm0, %v2205_v28  ;;  %vm3665_vm2 = vcmp.ne.s32.totalorder %v2438_v41, %v2435_v40  ;;  %v2459_v48 = vadd.s32 8, %v2431_v38  ;;  %vm3662_vm6 = vcmp.ne.s32.totalorder %v2446_v44, %v2435_v40  ;;  %v2467_v49 = vadd.s32 72, %v2431_v38 }
   0x8   :  { %v2023_v22 = vld [vmem:[%s3655_s0 + $0x8] sm:$0xff]   ;;  %v2026_v24 = vld [vmem:[%s3655_s0 + $0x10] sm:$0xff]   ;;  %v2027_v26 = vld [vmem:[%s3655_s0 + $0x18] sm:$0xff]   ;;  %30 = vst.msk [vmem:[#allocation2 + $0x38] sm:$0xff] %vm3666_vm0, %v2205_v28  ;;  %vm3664_vm9 = vcmp.ne.s32.totalorder %v2449_v45, %v2435_v40  ;;  %vm3663_vm12 = vcmp.ne.s32.totalorder %v2455_v47, %v2435_v40  ;;  %v2510_v55 = vadd.s32 48, %v2431_v38  ;;  %v2531_v60 = vadd.s32 32, %v2431_v38 }
   0x9   :  { %v2025_v23 = vld [vmem:[%s3655_s0 + $0x28] sm:$0xff]   ;;  %v2028_v25 = vld [vmem:[%s3655_s0 + $0x30] sm:$0xff]   ;;  %v2029_v27 = vld [vmem:[%s3655_s0 + $0x38] sm:$0xff]   ;;  %31 = vst.msk [vmem:[#allocation2 + $0x40] sm:$0xff] %vm3666_vm0, %v2205_v28  ;;  %vm3661_vm14 = vcmp.ne.s32.totalorder %v2459_v48, %v2435_v40  ;;  %v2539_v63 = vadd.s32 56, %v2431_v38  ;;  %v2560_v5 = vadd.s32 40, %v2431_v38 }
   0xa   :  { %333 = vperm.xlu0 %2012, %v313_v9   ;;  %339 = vperm.xlu1 %2013, %v315_v10   ;;  %32 = vst.msk [vmem:[#allocation2 + $0x48] sm:$0xff] %vm3666_vm0, %v2205_v28  ;;  %33 = vst.msk [vmem:[#allocation2 + $0x50] sm:$0xff] %vm3666_vm0, %v2205_v28  ;;  %v2443_v42 = vld [vmem:[%s3657_s3] ss:$0 sm:$0xff] }
   0xb   :  { %1964 = vmatpush3.bf16.xpose.msra.mxu0 %v2015_v2  ;;  %2002 = vmatpush3.bf16.xpose.msra.mxu1 %v2015_v2  ;;  %34 = vst.msk [vmem:[#allocation2 + $0x58] sm:$0xff] %vm3666_vm0, %v2205_v28  ;;  %35 = vst.msk [vmem:[#allocation2 + $0x60] sm:$0xff] %vm3666_vm0, %v2205_v28  ;;  %v2693_v36 = vld [vmem:[#allocation2] sm:$0xff] }
   0xc   :  { %1965 = vmatprep.subr.bf16.mxu0 %v2016_v3  ;;  %1995 = vmatprep.subr.bf16.mxu1 %v2016_v3  ;;  %36 = vst.msk [vmem:[#allocation2 + $0x68] sm:$0xff] %vm3666_vm0, %v2205_v28  ;;  %37 = vst.msk [vmem:[#allocation2 + $0x70] sm:$0xff] %vm3666_vm0, %v2205_v28 }
   0xd   :  { %38 = vst.msk [vmem:[#allocation2 + $0x78] sm:$0xff] %vm3666_vm0, %v2205_v28  ;;  %39 = vst.msk [vmem:[#allocation3] sm:$0xff] %vm3666_vm0, %v3669_v29 }
   0xe   :  { %342 = vperm.xlu0 %2012, %v316_v11   ;;  %345 = vperm.xlu1 %2013, %v317_v12   ;;  %40 = vst.msk [vmem:[#allocation3 + $0x8] sm:$0xff] %vm3666_vm0, %v3669_v29  ;;  %41 = vst.msk [vmem:[#allocation3 + $0x10] sm:$0xff] %vm3666_vm0, %v3669_v29  ;;  %v2760_v10 = vld [vmem:[#allocation2 + $0x30] sm:$0xff] }
   0xf   :  { %42 = vst.msk [vmem:[#allocation3 + $0x18] sm:$0xff] %vm3666_vm0, %v3669_v29  ;;  %43 = vst.msk [vmem:[#allocation3 + $0x20] sm:$0xff] %vm3666_vm0, %v3669_v29 }
  0x10   :  { %44 = vst.msk [vmem:[#allocation3 + $0x28] sm:$0xff] %vm3666_vm0, %v3669_v29  ;;  %45 = vst.msk [vmem:[#allocation3 + $0x30] sm:$0xff] %vm3666_vm0, %v3669_v29  ;;  %v2720_v2 = vld [vmem:[#allocation2 + $0x40] sm:$0xff] }
  0x11   :  { %46 = vst.msk [vmem:[#allocation3 + $0x38] sm:$0xff] %vm3666_vm0, %v3669_v29  ;;  %47 = vst.msk [vmem:[#allocation3 + $0x40] sm:$0xff] %vm3666_vm0, %v3669_v29 }
  0x12   :  { %348 = vperm.xlu0 %2012, %v318_v14   ;;  %351 = vperm.xlu1 %2013, %v319_v15   ;;  %48 = vst.msk [vmem:[#allocation3 + $0x48] sm:$0xff] %vm3666_vm0, %v3669_v29  ;;  %49 = vst.msk [vmem:[#allocation3 + $0x50] sm:$0xff] %vm3666_vm0, %v3669_v29 }
  0x13   :  { %1966 = vmatpush3.bf16.xpose.msra.mxu0 %v2016_v3  ;;  %2003 = vmatpush3.bf16.xpose.msra.mxu1 %v2016_v3  ;;  %50 = vst.msk [vmem:[#allocation3 + $0x58] sm:$0xff] %vm3666_vm0, %v3669_v29  ;;  %51 = vst.msk [vmem:[#allocation3 + $0x60] sm:$0xff] %vm3666_vm0, %v3669_v29 }
  0x14   :  { %1967 = vmatprep.subr.bf16.mxu0 %v2017_v6  ;;  %1996 = vmatprep.subr.bf16.mxu1 %v2017_v6  ;;  %52 = vst.msk [vmem:[#allocation3 + $0x68] sm:$0xff] %vm3666_vm0, %v3669_v29  ;;  %53 = vst.msk [vmem:[#allocation3 + $0x70] sm:$0xff] %vm3666_vm0, %v3669_v29 }
  0x15   :  { %54 = vst.msk [vmem:[#allocation3 + $0x78] sm:$0xff] %vm3666_vm0, %v3669_v29  ;;  %55 = vst.msk [vmem:[#allocation4] sm:$0xff] %vm3666_vm0, %v3669_v29 }
  0x16   :  { %354 = vperm.xlu0 %2012, %v320_v16   ;;  %360 = vperm.xlu1 %2013, %v322_v17   ;;  %56 = vst.msk [vmem:[#allocation4 + $0x8] sm:$0xff] %vm3666_vm0, %v3669_v29  ;;  %57 = vst.msk [vmem:[#allocation4 + $0x10] sm:$0xff] %vm3666_vm0, %v3669_v29 }
  0x17   :  { %58 = vst.msk [vmem:[#allocation4 + $0x18] sm:$0xff] %vm3666_vm0, %v3669_v29  ;;  %59 = vst.msk [vmem:[#allocation4 + $0x20] sm:$0xff] %vm3666_vm0, %v3669_v29 }
  0x18   :  { %60 = vst.msk [vmem:[#allocation4 + $0x28] sm:$0xff] %vm3666_vm0, %v3669_v29  ;;  %61 = vst.msk [vmem:[#allocation4 + $0x30] sm:$0xff] %vm3666_vm0, %v3669_v29 }
  0x19   :  { %62 = vst.msk [vmem:[#allocation4 + $0x38] sm:$0xff] %vm3666_vm0, %v3669_v29  ;;  %63 = vst.msk [vmem:[#allocation4 + $0x40] sm:$0xff] %vm3666_vm0, %v3669_v29 }
  0x1a   :  { %357 = vperm.xlu0 %2012, %v321_v19   ;;  %64 = vst.msk [vmem:[#allocation4 + $0x48] sm:$0xff] %vm3666_vm0, %v3669_v29  ;;  %65 = vst.msk [vmem:[#allocation4 + $0x50] sm:$0xff] %vm3666_vm0, %v3669_v29 }
  0x1b   :  { %1968 = vmatpush3.bf16.xpose.msra.mxu0 %v2017_v6  ;;  %2004 = vmatpush3.bf16.xpose.msra.mxu1 %v2017_v6  ;;  %66 = vst.msk [vmem:[#allocation4 + $0x58] sm:$0xff] %vm3666_vm0, %v3669_v29  ;;  %67 = vst.msk [vmem:[#allocation4 + $0x60] sm:$0xff] %vm3666_vm0, %v3669_v29 }
  0x1c   :  { %1969 = vmatprep.subr.bf16.mxu0 %v2018_v13  ;;  %1997 = vmatprep.subr.bf16.mxu1 %v2018_v13  ;;  %68 = vst.msk [vmem:[#allocation4 + $0x68] sm:$0xff] %vm3666_vm0, %v3669_v29  ;;  %69 = vst.msk [vmem:[#allocation4 + $0x70] sm:$0xff] %vm3666_vm0, %v3669_v29 }
  0x1d   :  { %70 = vst.msk [vmem:[#allocation4 + $0x78] sm:$0xff] %vm3666_vm0, %v3669_v29  ;;  %71 = vst.msk [vmem:[#allocation5] sm:$0xff] %vm3666_vm0, %v3669_v29  ;;  %v847_v17 = vld [vmem:[#allocation4 + $0x8] sm:$0xff] }
  0x1e   :  { %72 = vst.msk [vmem:[#allocation5 + $0x8] sm:$0xff] %vm3666_vm0, %v3669_v29  ;;  %73 = vst.msk [vmem:[#allocation5 + $0x10] sm:$0xff] %vm3666_vm0, %v3669_v29 }
  0x1f   :  { %74 = vst.msk [vmem:[#allocation5 + $0x18] sm:$0xff] %vm3666_vm0, %v3669_v29  ;;  %75 = vst.msk [vmem:[#allocation5 + $0x20] sm:$0xff] %vm3666_vm0, %v3669_v29 }
  0x20   :  { %76 = vst.msk [vmem:[#allocation5 + $0x28] sm:$0xff] %vm3666_vm0, %v3669_v29  ;;  %77 = vst.msk [vmem:[#allocation5 + $0x30] sm:$0xff] %vm3666_vm0, %v3669_v29 }
  0x21   :  { %78 = vst.msk [vmem:[#allocation5 + $0x38] sm:$0xff] %vm3666_vm0, %v3669_v29  ;;  %79 = vst.msk [vmem:[#allocation5 + $0x40] sm:$0xff] %vm3666_vm0, %v3669_v29 }
  0x22   :  { %80 = vst.msk [vmem:[#allocation5 + $0x48] sm:$0xff] %vm3666_vm0, %v3669_v29  ;;  %81 = vst.msk [vmem:[#allocation5 + $0x50] sm:$0xff] %vm3666_vm0, %v3669_v29 }
  0x23   :  { %1970 = vmatpush3.bf16.xpose.msra.mxu0 %v2018_v13  ;;  %2005 = vmatpush3.bf16.xpose.msra.mxu1 %v2018_v13  ;;  %82 = vst.msk [vmem:[#allocation5 + $0x58] sm:$0xff] %vm3666_vm0, %v3669_v29  ;;  %83 = vst.msk [vmem:[#allocation5 + $0x60] sm:$0xff] %vm3666_vm0, %v3669_v29  ;;  %v3739_v13 = vmov 0 }
  0x24   :  { %1971 = vmatprep.subr.bf16.mxu0 %v2019_v18  ;;  %1998 = vmatprep.subr.bf16.mxu1 %v2019_v18  ;;  %84 = vst.msk [vmem:[#allocation5 + $0x68] sm:$0xff] %vm3666_vm0, %v3669_v29  ;;  %85 = vst.msk [vmem:[#allocation5 + $0x70] sm:$0xff] %vm3666_vm0, %v3669_v29 }
  0x25   :  { %86 = vst.msk [vmem:[#allocation5 + $0x78] sm:$0xff] %vm3666_vm0, %v3669_v29  ;;  %3757 = vst [vmem:[#allocation12_spill] sm:$0xff] %v2720_v2 }
  0x26   :  { %3768 = vst [vmem:[#allocation20_spill] sm:$0xff] %v2760_v10 }
  0x2b   :  { %1972 = vmatpush3.bf16.xpose.msra.mxu0 %v2019_v18  ;;  %2006 = vmatpush3.bf16.xpose.msra.mxu1 %v2019_v18 }
  0x2c   :  { %1973 = vmatprep.subr.bf16.mxu0 %v2020_v20  ;;  %1999 = vmatprep.subr.bf16.mxu1 %v2020_v20 }
  0x33   :  { %1974 = vmatpush3.bf16.xpose.msra.mxu0 %v2020_v20  ;;  %2007 = vmatpush3.bf16.xpose.msra.mxu1 %v2020_v20 }
  0x34   :  { %1975 = vmatprep.subr.bf16.mxu0 %v2021_v21  ;;  %2000 = vmatprep.subr.bf16.mxu1 %v2021_v21 }
  0x3b   :  { %1976 = vmatpush3.bf16.xpose.msra.mxu0 %v2021_v21  ;;  %2008 = vmatpush3.bf16.xpose.msra.mxu1 %v2021_v21  ;;  %v2740_v21 = vld [vmem:[#allocation2 + $0x8] sm:$0xff] }
  0x3c   :  { %3763 = vst [vmem:[#allocation16_spill] sm:$0xff] %v2740_v21 }
  0x42   :  { %1978 = vmatmul.mubr.bf16.vlgmr.msra.gmra.mrb[0].mxu0 %v2023_v22  ;;  %1986 = vmatmul.mubr.bf16.vlgmr.msra.gmra.mrb[0].mxu1 %v2025_v23 }
  0x43   :  { %1981 = vmatprep.mubr.bf16.mxu0 %v2026_v24  ;;  %1989 = vmatprep.mubr.bf16.mxu1 %v2028_v25 }
  0x4a   :  { %1982 = vmatmul.mubr.bf16.gmra.mrb[4].mxu0 %v2027_v26  ;;  %1990 = vmatmul.mubr.bf16.gmra.mrb[4].mxu1 %v2029_v27 }
  0x85   :  { %v331_v30 = vpop.permute.xlu0 %330  ;;  %v337_v31 = vpop.permute.xlu1 %336 }
  0x86   :  { %vm383_vm1 = vcmp.eq.s32.totalorder %v337_v31, %v2443_v42  ;;  %vm381_vm3 = vcmp.eq.s32.totalorder %v331_v30, %v2443_v42  ;;  %v2673_v30 = vld [vmem:[%s3656_s2 + $0x58] sm:$0xff]  ;;  %v2679_v31 = vld [vmem:[%s3656_s2 + $0x60] sm:$0xff] }
  0x87   :  { %vm2473_vm8 = vmand %vm383_vm1, %vm3665_vm2  ;;  %vm3743_vm2 = vcmp.ne.s32.totalorder %v2539_v63, %v2435_v40  ;;  %3749 = vst [vmem:[#allocation6_spill] sm:$0xff] %v2673_v30 }
  0x88   :  { %vm2483_vm11 = vmand %vm381_vm3, %vm3659_vm4  ;;  %vm3660_vm3 = vcmp.ne.s32.totalorder %v2467_v49, %v2435_v40  ;;  %3750 = vst [vmem:[#allocation7_spill] sm:$0xff] %v2679_v31 }
  0x89   :  { %v334_v32 = vpop.permute.xlu0 %333  ;;  %v340_v33 = vpop.permute.xlu1 %339 }
  0x8a   :  { %vm384_vm5 = vcmp.eq.s32.totalorder %v340_v33, %v2443_v42  ;;  %vm382_vm13 = vcmp.eq.s32.totalorder %v334_v32, %v2443_v42  ;;  %v325_v32 = vld [vmem:[%s3656_s2 + $0x68] sm:$0xff]  ;;  %v326_v33 = vld [vmem:[%s3656_s2 + $0x70] sm:$0xff] }
  0x8b   :  { %vm2495_vm15 = vmand %vm384_vm5, %vm3662_vm6 }
  0x8d   :  { %v2425_v34 = vpop.permute.xlu0 %342  ;;  %v2427_v35 = vpop.permute.xlu1 %345 }
  0x91   :  { %v2429_v37 = vpop.permute.xlu0 %348  ;;  %v2433_v39 = vpop.permute.xlu1 %351 }
  0x92   :  { %vm388_vm6 = vcmp.eq.s32.totalorder %v2433_v39, %v2443_v42 }
  0x95   :  { %v355_v43 = vpop.permute.xlu0 %354  ;;  %v361_v46 = vpop.permute.xlu1 %360 }
  0x96   :  { %vm391_vm7 = vcmp.eq.s32.totalorder %v361_v46, %v2443_v42  ;;  %vm389_vm10 = vcmp.eq.s32.totalorder %v355_v43, %v2443_v42 }
  0x97   :  { %vm2505_vm4 = vmand %vm391_vm7, %vm3664_vm9  ;;  %vm386_vm9 = vcmp.eq.s32.totalorder %v2427_v35, %v2443_v42  ;;  %v2691_v35 = vld [vmem:[#allocation2 + $0x10] sm:$0xff] }
  0x98   :  { %v3732_v54 = vsel %vm2505_vm4, 4294967295, %v3731_v54  ;;  %vm2515_vm5 = vmand %vm389_vm10, %vm3663_vm12 }
  0x99   :  { %v358_v50 = vpop.permute.xlu0 %357  ;;  %v3734_v56 = vsel %vm2515_vm5, 4294967295, %v3733_v56  ;;  %vm2526_vm7 = vmand %vm382_vm13, %vm3661_vm14  ;;  %vm387_vm13 = vcmp.eq.s32.totalorder %v2429_v37, %v2443_v42  ;;  %vm3690_vm14 = vcmp.ne.s32.totalorder %v2531_v60, %v2435_v40 }
  0x9a   :  { %vm390_vm1 = vcmp.eq.s32.totalorder %v358_v50, %v2443_v42  ;;  %vm2623_vm4 = vmand %vm388_vm6, %vm3743_vm2  ;;  %v2701_v50 = vld [vmem:[#allocation2 + $0x50] sm:$0xff]  ;;  %vm3752_vm2 = vcmask 7168  }
  0x9b   :  { %vm2544_vm10 = vmand %vm390_vm1, %vm3660_vm3  ;;  %vm3693_vm1 = vcmp.ne.s32.totalorder %v2510_v55, %v2435_v40  ;;  %vm385_vm3 = vcmp.eq.s32.totalorder %v2425_v34, %v2443_v42  ;;  %v327_v34 = vld [vmem:[%s3656_s2 + $0x78] sm:$0xff]  ;;  %3751 = vst [vmem:[#allocation8_spill] sm:$0xff] %v2701_v50 }
  0x9c   :  { %vm2605_vm0 = vmand %vm387_vm13, %vm3693_vm1 }
  0x9d   :  { %v3740_v13 = vsel %vm2605_vm0, 4294967295, %v3739_v13  ;;  %vm2612_vm12 = vmand %vm385_vm3, %vm3690_vm14  ;;  %vm3746_vm3 = vcmp.ne.s32.totalorder %v2560_v5, %v2435_v40 }
  0x9e   :  { %vm2635_vm13 = vmand %vm386_vm9, %vm3746_vm3 }
  0x9f   :  { %vm3754_vm6 = vmmov %vm3752_vm2 }
  0xa0   :  { %vm3758_vm9 = vmmov %vm3752_vm2 }
  0xa1   :  { %vm3760_vm3 = vmmov %vm3752_vm2 }
 0x115   :  { %v2519_v57 = vpop.f32.mrb[0].mxu0  ;;  %v2521_v58 = vpop.f32.mrb[0].mxu1 }
 0x116   :  { %417 = vmax.xlane.f32.xlu0 %v2519_v57  ;;  %v2534_v61 = vpop.f32.mrb[1].mxu0  ;;  %v2536_v62 = vpop.f32.mrb[1].mxu1 }
 0x117   :  { %413 = vmax.xlane.f32.xlu1 %v2534_v61  ;;  %v2555_v3 = vpop.f32.mrb[2].mxu0  ;;  %v2557_v4 = vpop.f32.mrb[2].mxu1  ;;  %v3809_v59 = vsel %vm2483_vm11, %v2534_v61, 0.0 }
 0x118   :  { %v2570_v8 = vpop.f32.mrb[3].mxu0  ;;  %v2572_v9 = vpop.f32.mrb[3].mxu1 }
 0x11a   :  { %433 = vmax.xlane.f32.xlu0 %v2521_v58 }
 0x11b   :  { %419 = vmax.xlane.f32.xlu1 %v2555_v3 }
 0x11d   :  { %v2616_v15 = vpop.f32.mrb[4].mxu0  ;;  %v2618_v16 = vpop.f32.mrb[4].mxu1 }
 0x11e   :  { %429 = vmax.xlane.f32.xlu0 %v2536_v62  ;;  %v2628_v18 = vpop.f32.mrb[5].mxu0  ;;  %v2630_v19 = vpop.f32.mrb[5].mxu1 }
 0x11f   :  { %435 = vmax.xlane.f32.xlu1 %v2557_v4  ;;  %v2643_v22 = vpop.f32.mrb[6].mxu0  ;;  %v2645_v23 = vpop.f32.mrb[6].mxu1 }
 0x120   :  { %v2650_v25 = vpop.f32.mrb[7].mxu0  ;;  %v2652_v26 = vpop.f32.mrb[7].mxu1  ;;  %v3831_v14 = vsel %vm2623_vm4, %v2643_v22, 0.0 }
 0x122   :  { %415 = vmax.xlane.f32.xlu0 %v2570_v8 }
 0x123   :  { %431 = vmax.xlane.f32.xlu1 %v2572_v9 }
 0x126   :  { %425 = vmax.xlane.f32.xlu0 %v2616_v15 }
 0x127   :  { %427 = vmax.xlane.f32.xlu1 %v2643_v22 }
 0x12a   :  { %441 = vmax.xlane.f32.xlu0 %v2618_v16 }
 0x12b   :  { %443 = vmax.xlane.f32.xlu1 %v2645_v23 }
 0x12e   :  { %421 = vmax.xlane.f32.xlu0 %v2628_v18 }
 0x12f   :  { %423 = vmax.xlane.f32.xlu1 %v2650_v25 }
 0x132   :  { %437 = vmax.xlane.f32.xlu0 %v2630_v19 }
 0x133   :  { %439 = vmax.xlane.f32.xlu1 %v2652_v26 }
 0x144   :  { %363 = vperm.xlu1 %2013, %v2673_v30   ;;  %v2780_v30 = vld [vmem:[#allocation2 + $0x70] sm:$0xff] }
 0x145   :  { %3774 = vst [vmem:[#allocation24_spill] sm:$0xff] %v2780_v30 }
 0x148   :  { %366 = vperm.xlu0 %2012, %v2679_v31   ;;  %369 = vperm.xlu1 %2013, %v325_v32  }
 0x14c   :  { %372 = vperm.xlu0 %2012, %v326_v33   ;;  %375 = vperm.xlu1 %2013, %v327_v34   ;;  %v2708_v33 = vld [vmem:[#allocation2 + $0x18] sm:$0xff] }
 0x14d   :  { %3753 = vst [vmem:[#allocation9_spill] sm:$0xff] %v2708_v33  ;;  %v2727_v34 = vld [vmem:[#allocation2 + $0x58] sm:$0xff] }
 0x14e   :  { %3759 = vst [vmem:[#allocation13_spill] sm:$0xff] %v2727_v34 }
 0x1a3   :  { %v418_v37 = vpop.xlane.xlu0 %417 }
 0x1a4   :  { %v2696_v39 = vmax.f32 %v2691_v35, %v418_v37  ;;  %v414_v43 = vpop.xlane.xlu1 %413 }
 0x1a5   :  { %v2699_v46 = vmax.f32 %v2693_v36, %v414_v43 }
 0x1a6   :  { %512 = vst.msk [vmem:[#allocation2 + $0x10] sm:$0xff] %vm3752_vm2, %v2696_v39  ;;  %634 = vperm.xlu0 %2012, %v2696_v39  }
 0x1a7   :  { %510 = vst.msk [vmem:[#allocation2] sm:$0xff] %vm3754_vm6, %v2699_v46  ;;  %v434_v37 = vpop.xlane.xlu0 %433  ;;  %vm3765_vm6 = vmmov %vm3752_vm2 }
 0x1a8   :  { %v2715_v43 = vmax.f32 %v2701_v50, %v434_v37  ;;  %v420_v12 = vpop.xlane.xlu1 %419  ;;  %v2747_v37 = vld [vmem:[#allocation2 + $0x48] sm:$0xff] }
 0x1a9   :  { %v2718_v32 = vmax.f32 %v2708_v33, %v420_v12  ;;  %3764 = vst [vmem:[#allocation17_spill] sm:$0xff] %v2747_v37 }
 0x1aa   :  { %3755 = vst [vmem:[#allocation10_spill] sm:$0xff] %v2715_v43  ;;  %520 = vst.msk [vmem:[#allocation2 + $0x50] sm:$0xff] %vm3758_vm9, %v2715_v43  ;;  %674 = vperm.xlu0 %2012, %v2715_v43  }
 0x1ab   :  { %3756 = vst [vmem:[#allocation11_spill] sm:$0xff] %v2718_v32  ;;  %513 = vst.msk [vmem:[#allocation2 + $0x18] sm:$0xff] %vm3760_vm3, %v2718_v32  ;;  %v430_v12 = vpop.xlane.xlu0 %429  ;;  %639 = vperm.xlu1 %2013, %v2718_v32  }
 0x1ac   :  { %v2735_v7 = vmax.f32 %v2720_v2, %v430_v12  ;;  %v436_v27 = vpop.xlane.xlu1 %435  ;;  %vm3769_vm9 = vmmov %vm3752_vm2  ;;  %v2767_v12 = vld [vmem:[#allocation2 + $0x38] sm:$0xff] }
 0x1ad   :  { %v2738_v28 = vmax.f32 %v2727_v34, %v436_v27  ;;  %3770 = vst [vmem:[#allocation21_spill] sm:$0xff] %v2767_v12  ;;  %vm3771_vm3 = vmmov %vm3752_vm2 }
 0x1ae   :  { %3761 = vst [vmem:[#allocation14_spill] sm:$0xff] %v2735_v7  ;;  %518 = vst.msk [vmem:[#allocation2 + $0x40] sm:$0xff] %vm3752_vm2, %v2735_v7  ;;  %624 = vperm.xlu0 %2012, %v2699_v46  }
 0x1af   :  { %3762 = vst [vmem:[#allocation15_spill] sm:$0xff] %v2738_v28  ;;  %521 = vst.msk [vmem:[#allocation2 + $0x58] sm:$0xff] %vm3765_vm6, %v2738_v28  ;;  %v416_v27 = vpop.xlane.xlu0 %415  ;;  %679 = vperm.xlu1 %2013, %v2738_v28  }
 0x1b0   :  { %v2755_v1 = vmax.f32 %v2740_v21, %v416_v27  ;;  %v432_v24 = vpop.xlane.xlu1 %431  ;;  %v2787_v27 = vld [vmem:[#allocation2 + $0x78] sm:$0xff]  ;;  %vm3776_vm6 = vmmov %vm3752_vm2 }
 0x1b1   :  { %v2758_v6 = vmax.f32 %v2747_v37, %v432_v24  ;;  %3775 = vst [vmem:[#allocation25_spill] sm:$0xff] %v2787_v27 }
 0x1b2   :  { %3766 = vst [vmem:[#allocation18_spill] sm:$0xff] %v2755_v1  ;;  %511 = vst.msk [vmem:[#allocation2 + $0x8] sm:$0xff] %vm3769_vm9, %v2755_v1  ;;  %664 = vperm.xlu0 %2012, %v2735_v7  }
 0x1b3   :  { %3767 = vst [vmem:[#allocation19_spill] sm:$0xff] %v2758_v6  ;;  %519 = vst.msk [vmem:[#allocation2 + $0x48] sm:$0xff] %vm3771_vm3, %v2758_v6  ;;  %v426_v24 = vpop.xlane.xlu0 %425  ;;  %629 = vperm.xlu1 %2013, %v2755_v1   ;;  %v2800_v1 = vld [vmem:[#allocation2 + $0x20] sm:$0xff] }
 0x1b4   :  { %v2775_v29 = vmax.f32 %v2760_v10, %v426_v24  ;;  %v428_v11 = vpop.xlane.xlu1 %427  ;;  %3779 = vst [vmem:[#allocation28_spill] sm:$0xff] %v2800_v1  ;;  %vm3780_vm9 = vmmov %vm3752_vm2  ;;  %v2807_v24 = vld [vmem:[#allocation2 + $0x28] sm:$0xff] }
 0x1b5   :  { %v2778_v31 = vmax.f32 %v2767_v12, %v428_v11  ;;  %3781 = vst [vmem:[#allocation29_spill] sm:$0xff] %v2807_v24  ;;  %vm3782_vm3 = vmmov %vm3752_vm2 }
 0x1b6   :  { %3772 = vst [vmem:[#allocation22_spill] sm:$0xff] %v2775_v29  ;;  %516 = vst.msk [vmem:[#allocation2 + $0x30] sm:$0xff] %vm3752_vm2, %v2775_v29  ;;  %654 = vperm.xlu0 %2012, %v2775_v29  }
 0x1b7   :  { %3773 = vst [vmem:[#allocation23_spill] sm:$0xff] %v2778_v31  ;;  %517 = vst.msk [vmem:[#allocation2 + $0x38] sm:$0xff] %vm3776_vm6, %v2778_v31  ;;  %v442_v11 = vpop.xlane.xlu0 %441  ;;  %669 = vperm.xlu1 %2013, %v2758_v6   ;;  %v2820_v6 = vld [vmem:[#allocation2 + $0x60] sm:$0xff] }
 0x1b8   :  { %v2795_v37 = vmax.f32 %v2780_v30, %v442_v11  ;;  %v444_v21 = vpop.xlane.xlu1 %443  ;;  %3785 = vst [vmem:[#allocation32_spill] sm:$0xff] %v2820_v6  ;;  %v2827_v11 = vld [vmem:[#allocation2 + $0x68] sm:$0xff]  ;;  %vm3787_vm6 = vmmov %vm3752_vm2 }
 0x1b9   :  { %v2798_v10 = vmax.f32 %v2787_v27, %v444_v21  ;;  %3786 = vst [vmem:[#allocation33_spill] sm:$0xff] %v2827_v11  ;;  %v2835_v27 = vadd.s32 88, %v2431_v38 }
 0x1ba   :  { %3777 = vst [vmem:[#allocation26_spill] sm:$0xff] %v2795_v37  ;;  %524 = vst.msk [vmem:[#allocation2 + $0x70] sm:$0xff] %vm3780_vm9, %v2795_v37  ;;  %694 = vperm.xlu0 %2012, %v2795_v37  }
 0x1bb   :  { %3778 = vst [vmem:[#allocation27_spill] sm:$0xff] %v2798_v10  ;;  %525 = vst.msk [vmem:[#allocation2 + $0x78] sm:$0xff] %vm3782_vm3, %v2798_v10  ;;  %v422_v21 = vpop.xlane.xlu0 %421  ;;  %659 = vperm.xlu1 %2013, %v2778_v31  }
 0x1bc   :  { %v2815_v12 = vmax.f32 %v2800_v1, %v422_v21  ;;  %v424_v29 = vpop.xlane.xlu1 %423  ;;  %vm3790_vm9 = vmmov %vm3752_vm2  ;;  %v2849_v21 = vadd.s32 96, %v2431_v38 }
 0x1bd   :  { %v2818_v30 = vmax.f32 %v2807_v24, %v424_v29  ;;  %vm3791_vm3 = vmmov %vm3752_vm2  ;;  %v2872_v24 = vadd.s32 112, %v2431_v38 }
 0x1be   :  { %3783 = vst [vmem:[#allocation30_spill] sm:$0xff] %v2815_v12  ;;  %514 = vst.msk [vmem:[#allocation2 + $0x20] sm:$0xff] %vm3752_vm2, %v2815_v12  ;;  %644 = vperm.xlu0 %2012, %v2815_v12   ;;  %vm3694_vm2 = vcmp.ne.s32.totalorder %v2835_v27, %v2435_v40 }
 0x1bf   :  { %3784 = vst [vmem:[#allocation31_spill] sm:$0xff] %v2818_v30  ;;  %515 = vst.msk [vmem:[#allocation2 + $0x28] sm:$0xff] %vm3787_vm6, %v2818_v30  ;;  %v438_v29 = vpop.xlane.xlu0 %437  ;;  %699 = vperm.xlu1 %2013, %v2798_v10   ;;  %vm3710_vm0 = vcmp.ne.s32.totalorder %v2872_v24, %v2435_v40 }
 0x1c0   :  { %v2838_v37 = vmax.f32 %v2820_v6, %v438_v29  ;;  %v440_v1 = vpop.xlane.xlu1 %439 }
 0x1c1   :  { %v2841_v12 = vmax.f32 %v2827_v11, %v440_v1  ;;  %v2859_v1 = vadd.s32 104, %v2431_v38 }
 0x1c2   :  { %3788 = vst [vmem:[#allocation34_spill] sm:$0xff] %v2838_v37  ;;  %522 = vst.msk [vmem:[#allocation2 + $0x60] sm:$0xff] %vm3790_vm9, %v2838_v37  ;;  %684 = vperm.xlu0 %2012, %v2838_v37  }
 0x1c3   :  { %3789 = vst [vmem:[#allocation35_spill] sm:$0xff] %v2841_v12  ;;  %523 = vst.msk [vmem:[#allocation2 + $0x68] sm:$0xff] %vm3791_vm3, %v2841_v12  ;;  %649 = vperm.xlu1 %2013, %v2818_v30   ;;  %vm3703_vm3 = vcmp.ne.s32.totalorder %v2849_v21, %v2435_v40  ;;  %vm3702_vm14 = vcmp.ne.s32.totalorder %v2859_v1, %v2435_v40 }
 0x1c4   :  { %v364_v29 = vpop.permute.xlu1 %363 }
 0x1c5   :  { %vm392_vm6 = vcmp.eq.s32.totalorder %v364_v29, %v2443_v42  ;;  %v2878_v29 = vadd.s32 120, %v2431_v38 }
 0x1c6   :  { %vm2865_vm9 = vmand %vm392_vm6, %vm3694_vm2 }
 0x1c7   :  { %v367_v11 = vpop.permute.xlu0 %366  ;;  %689 = vperm.xlu1 %2013, %v2841_v12   ;;  %v3794_v12 = vmov 0 }
 0x1c8   :  { %vm393_vm6 = vcmp.eq.s32.totalorder %v367_v11, %v2443_v42  ;;  %v370_v6 = vpop.permute.xlu1 %369 }
 0x1c9   :  { %vm394_vm1 = vcmp.eq.s32.totalorder %v370_v6, %v2443_v42  ;;  %vm2888_vm2 = vmand %vm393_vm6, %vm3703_vm3  ;;  %vm3709_vm6 = vcmp.ne.s32.totalorder %v2878_v29, %v2435_v40 }
 0x1ca   :  { %v3795_v12 = vsel %vm2888_vm2, 4294967295, %v3794_v12  ;;  %vm2895_vm5 = vmand %vm394_vm1, %vm3702_vm14 }
 0x1cb   :  { %v373_v11 = vpop.permute.xlu0 %372  ;;  %v3837_v0 = vsel %vm2895_vm5, %v2652_v26, 0.0 }
 0x1cc   :  { %vm395_vm1 = vcmp.eq.s32.totalorder %v373_v11, %v2443_v42  ;;  %v376_v10 = vpop.permute.xlu1 %375 }
 0x1cd   :  { %vm396_vm14 = vcmp.eq.s32.totalorder %v376_v10, %v2443_v42  ;;  %vm2914_vm3 = vmand %vm395_vm1, %vm3710_vm0  ;;  %v3802_v10 = vmov 0.0   ;;  %vm3804_vm1 = vnez %v3734_v56  ;;  %vm3807_vm0 = vnez %v3795_v12 }
 0x1ce   :  { %vm2921_vm2 = vmand %vm396_vm14, %vm3709_vm6  ;;  %v1898_v37 = vsel %vm2526_vm7, 1.0, %v3802_v10  ;;  %v1900_v34 = vsel %vm2495_vm15, 1.0, %v3802_v10  ;;  %v1902_v7 = vsel %vm2635_vm13, 1.0, %v3802_v10  ;;  %v1897_v11 = vsel %vm2483_vm11, 1.0, %v3802_v10 }
 0x1cf   :  { %v1904_v42 = vsel %vm2623_vm4, 1.0, %v3802_v10  ;;  %vm3803_vm14 = vnez %v3740_v13  ;;  %vm3805_vm6 = vnez %v3732_v54  ;;  %vm3812_vm11 = vcmp.ne.s32.totalorder %v2449_v45, %v2435_v40 }
 0x1d0   :  { %v3832_v13 = vsel %vm3805_vm6, %v2521_v58, 0.0  ;;  %v3834_v56 = vsel %vm3807_vm0, %v2630_v19, 0.0 }
 0x1e1   :  { %896 = vadd.xlane.f32.xlu0 %v1898_v37  ;;  %v1899_v37 = vsel %vm2473_vm8, 1.0, %v3802_v10 }
 0x1e5   :  { %900 = vadd.xlane.f32.xlu0 %v1900_v34  ;;  %v1906_v34 = vsel %vm2544_vm10, 1.0, %v3802_v10 }
 0x1e9   :  { %904 = vadd.xlane.f32.xlu0 %v1902_v7  ;;  %v1901_v7 = vsel %vm2612_vm12, 1.0, %v3802_v10 }
 0x1eb   :  { %894 = vadd.xlane.f32.xlu1 %v1897_v11  ;;  %v1908_v11 = vsel %vm2865_vm9, 1.0, %v3802_v10 }
 0x1ed   :  { %908 = vadd.xlane.f32.xlu0 %v1904_v42  ;;  %v1903_v42 = vsel %vm3803_vm14, 1.0, %v3802_v10 }
 0x1ef   :  { %898 = vadd.xlane.f32.xlu1 %v1899_v37  ;;  %v1910_v37 = vsel %vm2895_vm5, 1.0, %v3802_v10 }
 0x1f1   :  { %912 = vadd.xlane.f32.xlu0 %v1906_v34  ;;  %v1905_v34 = vsel %vm3804_vm1, 1.0, %v3802_v10 }
 0x1f3   :  { %902 = vadd.xlane.f32.xlu1 %v1901_v7  ;;  %v1912_v7 = vsel %vm2921_vm2, 1.0, %v3802_v10 }
 0x1f5   :  { %916 = vadd.xlane.f32.xlu0 %v1908_v11  ;;  %v1907_v11 = vsel %vm3805_vm6, 1.0, %v3802_v10 }
 0x1f7   :  { %906 = vadd.xlane.f32.xlu1 %v1903_v42  ;;  %v3806_v42 = vsel %vm2526_vm7, %v2570_v8, 0.0  ;;  %vm3814_vm7 = vcmp.ne.s32.totalorder %v2455_v47, %v2435_v40 }
 0x1f9   :  { %920 = vadd.xlane.f32.xlu0 %v1910_v37  ;;  %v1909_v37 = vsel %vm3807_vm0, 1.0, %v3802_v10  ;;  %vm3838_vm0 = vcmask 7168  }
 0x1fa   :  { %vm3840_vm4 = vmmov %vm3838_vm0 }
 0x1fb   :  { %910 = vadd.xlane.f32.xlu1 %v1905_v34  ;;  %v3808_v34 = vsel %vm2495_vm15, %v2555_v3, 0.0  ;;  %vm3813_vm15 = vcmp.ne.s32.totalorder %v2431_v38, %v2435_v40  ;;  %vm3842_vm5 = vmmov %vm3838_vm0 }
 0x1fc   :  { %vm3848_vm6 = vmmov %vm3838_vm0 }
 0x1fd   :  { %924 = vadd.xlane.f32.xlu0 %v1912_v7  ;;  %v1911_v7 = vsel %vm2914_vm3, 1.0, %v3802_v10 }
 0x1ff   :  { %914 = vadd.xlane.f32.xlu1 %v1907_v11  ;;  %v3810_v11 = vsel %vm2473_vm8, %v2519_v57, 0.0  ;;  %vm3811_vm8 = vcmp.ne.s32.totalorder %v2438_v41, %v2435_v40 }
 0x201   :  { %992 = vadd.xlane.f32.xlu0 %v3806_v42 }
 0x203   :  { %918 = vadd.xlane.f32.xlu1 %v1909_v37 }
 0x205   :  { %996 = vadd.xlane.f32.xlu0 %v3808_v34 }
 0x207   :  { %922 = vadd.xlane.f32.xlu1 %v1911_v7 }
 0x20b   :  { %990 = vadd.xlane.f32.xlu1 %v3809_v59 }
 0x20f   :  { %994 = vadd.xlane.f32.xlu1 %v3810_v11 }
 0x225   :  { %v635_v42 = vpop.permute.xlu0 %634 }
 0x226   :  { %v704_v53 = vsub.f32 %v2519_v57, %v635_v42 }
 0x228   :  { %v722_v37 = vmul.f32 1.442695, %v704_v53 }
 0x229   :  { %v675_v34 = vpop.permute.xlu0 %674 }
 0x22a   :  { %2030 = vpow2.f32 %v722_v37  ;;  %v712_v2 = vsub.f32 %v2521_v58, %v675_v34  ;;  %v640_v10 = vpop.permute.xlu1 %639  ;;  %v3836_v58 = vsel %vm2914_vm3, %v2618_v16, 0.0  ;;  %vm3847_vm3 = vmmov %vm3838_vm0 }
 0x22b   :  { %v705_v52 = vsub.f32 %v2555_v3, %v640_v10 }
 0x22c   :  { %v738_v7 = vmul.f32 1.442695, %v712_v2 }
 0x22d   :  { %v625_v32 = vpop.permute.xlu0 %624  ;;  %v724_v11 = vmul.f32 1.442695, %v705_v52 }
 0x22e   :  { %2032 = vpow2.f32 %v738_v7  ;;  %v702_v59 = vsub.f32 %v2534_v61, %v625_v32  ;;  %v680_v51 = vpop.permute.xlu1 %679 }
 0x22f   :  { %v713_v33 = vsub.f32 %v2557_v4, %v680_v51 }
 0x230   :  { %v718_v43 = vmul.f32 1.442695, %v702_v59 }
 0x231   :  { %v665_v50 = vpop.permute.xlu0 %664  ;;  %v740_v53 = vmul.f32 1.442695, %v713_v33 }
 0x232   :  { %2034 = vpow2.f32 %v718_v43  ;;  %v710_v57 = vsub.f32 %v2536_v62, %v665_v50  ;;  %v630_v42 = vpop.permute.xlu1 %629 }
 0x233   :  { %v703_v37 = vsub.f32 %v2570_v8, %v630_v42  ;;  %2036 = vpow2.f32 %v724_v11 }
 0x234   :  { %v2031_v2 = vpop.eup %2030  ;;  %v734_v3 = vmul.f32 1.442695, %v710_v57 }
 0x235   :  { %v720_v10 = vmul.f32 1.442695, %v703_v37  ;;  %v655_v34 = vpop.permute.xlu0 %654  ;;  %v752_v61 = vsel %vm3811_vm8, %v2031_v2, 0.0  ;;  %vm3815_vm8 = vcmp.ne.s32.totalorder %v2446_v44, %v2435_v40 }
 0x236   :  { %2038 = vpow2.f32 %v734_v3  ;;  %v708_v32 = vsub.f32 %v2616_v15, %v655_v34  ;;  %770 = vadd.xlane.f32.xlu0 %v752_v61  ;;  %v670_v43 = vpop.permute.xlu1 %669 }
 0x237   :  { %2040 = vpow2.f32 %v740_v53  ;;  %v711_v50 = vsub.f32 %v2572_v9, %v670_v43 }
 0x238   :  { %v2033_v33 = vpop.eup %2032  ;;  %2042 = vpow2.f32 %v720_v10  ;;  %v730_v8 = vmul.f32 1.442695, %v708_v32 }
 0x239   :  { %v736_v7 = vmul.f32 1.442695, %v711_v50  ;;  %v695_v52 = vpop.permute.xlu0 %694  ;;  %v760_v59 = vsel %vm3812_vm11, %v2033_v33, 0.0  ;;  %vm3816_vm11 = vcmp.ne.s32.totalorder %v2835_v27, %v2435_v40 }
 0x23a   :  { %v716_v41 = vsub.f32 %v2618_v16, %v695_v52  ;;  %786 = vadd.xlane.f32.xlu1 %v760_v59  ;;  %v660_v51 = vpop.permute.xlu1 %659  ;;  %2044 = vpow2.f32 %v730_v8 }
 0x23b   :  { %v709_v11 = vsub.f32 %v2643_v22, %v660_v51  ;;  %2046 = vpow2.f32 %v736_v7  ;;  %v851_v22 = vld [vmem:[#allocation4 + $0x28] sm:$0xff] }
 0x23c   :  { %v2035_v57 = vpop.eup %2034  ;;  %v746_v42 = vmul.f32 1.442695, %v716_v41 }
 0x23d   :  { %v732_v53 = vmul.f32 1.442695, %v709_v11  ;;  %v645_v37 = vpop.permute.xlu0 %644  ;;  %v750_v2 = vsel %vm3813_vm15, %v2035_v57, 0.0  ;;  %v2037_v3 = vpop.eup %2036  ;;  %vm3817_vm15 = vcmp.ne.s32.totalorder %v2459_v48, %v2435_v40 }
 0x23e   :  { %v706_v45 = vsub.f32 %v2628_v18, %v645_v37  ;;  %766 = vadd.xlane.f32.xlu0 %v750_v2  ;;  %v700_v10 = vpop.permute.xlu1 %699  ;;  %2048 = vpow2.f32 %v746_v42  ;;  %v753_v38 = vsel %vm3815_vm8, %v2037_v3, 0.0  ;;  %vm3819_vm8 = vcmp.ne.s32.totalorder %v2467_v49, %v2435_v40 }
 0x23f   :  { %v717_v34 = vsub.f32 %v2645_v23, %v700_v10  ;;  %2050 = vpow2.f32 %v732_v53 }
 0x240   :  { %v2039_v61 = vpop.eup %2038  ;;  %v726_v32 = vmul.f32 1.442695, %v706_v45 }
 0x241   :  { %v2041_v43 = vpop.eup %2040  ;;  %v748_v50 = vmul.f32 1.442695, %v717_v34  ;;  %v685_v33 = vpop.permute.xlu0 %684  ;;  %v758_v8 = vsel %vm3814_vm7, %v2039_v61, 0.0  ;;  %vm3818_vm7 = vcmp.ne.s32.totalorder %v2510_v55, %v2435_v40 }
 0x242   :  { %v2043_v7 = vpop.eup %2042  ;;  %v714_v52 = vsub.f32 %v2630_v19, %v685_v33  ;;  %782 = vadd.xlane.f32.xlu1 %v758_v8  ;;  %772 = vadd.xlane.f32.xlu0 %v753_v38  ;;  %v650_v59 = vpop.permute.xlu1 %649  ;;  %2052 = vpow2.f32 %v726_v32  ;;  %v761_v47 = vsel %vm3816_vm11, %v2041_v43, 0.0  ;;  %vm3820_vm11 = vcmp.ne.s32.totalorder %v2872_v24, %v2435_v40 }
 0x243   :  { %v707_v41 = vsub.f32 %v2650_v25, %v650_v59  ;;  %2054 = vpow2.f32 %v748_v50  ;;  %v751_v44 = vsel %vm3817_vm15, %v2043_v7, 0.0  ;;  %vm3821_vm15 = vcmp.ne.s32.totalorder %v2539_v63, %v2435_v40 }
 0x244   :  { %v742_v51 = vmul.f32 1.442695, %v714_v52  ;;  %v2045_v11 = vpop.eup %2044  ;;  %v850_v52 = vld [vmem:[#allocation4 + $0x20] sm:$0xff] }
 0x245   :  { %v728_v57 = vmul.f32 1.442695, %v707_v41  ;;  %v2047_v42 = vpop.eup %2046  ;;  %v756_v45 = vsel %vm3818_vm7, %v2045_v11, 0.0  ;;  %vm3822_vm7 = vcmp.ne.s32.totalorder %v2531_v60, %v2435_v40 }
 0x246   :  { %788 = vadd.xlane.f32.xlu0 %v761_v47  ;;  %768 = vadd.xlane.f32.xlu1 %v751_v44  ;;  %v690_v53 = vpop.permute.xlu1 %689  ;;  %2056 = vpow2.f32 %v742_v51  ;;  %v759_v27 = vsel %vm3819_vm8, %v2047_v42, 0.0  ;;  %vm3823_vm8 = vcmp.ne.s32.totalorder %v2878_v29, %v2435_v40  ;;  %v3827_v29 = vsel %vm2612_vm12, %v2628_v18, 0.0  ;;  %v849_v18 = vld [vmem:[#allocation4 + $0x18] sm:$0xff]  ;;  %vm3841_vm12 = vmmov %vm3838_vm0  ;;  %v852_v47 = vld [vmem:[#allocation4 + $0x30] sm:$0xff] }
 0x247   :  { %v715_v37 = vsub.f32 %v2652_v26, %v690_v53  ;;  %2058 = vpow2.f32 %v728_v57  ;;  %v853_v26 = vld [vmem:[#allocation4 + $0x38] sm:$0xff]  ;;  %v859_v53 = vld [vmem:[#allocation4 + $0x68] sm:$0xff] }
 0x248   :  { %v2049_v2 = vpop.eup %2048  ;;  %v857_v51 = vld [vmem:[#allocation4 + $0x58] sm:$0xff] }
 0x249   :  { %v744_v3 = vmul.f32 1.442695, %v715_v37  ;;  %v2051_v48 = vpop.eup %2050  ;;  %v764_v34 = vsel %vm3820_vm11, %v2049_v2, 0.0  ;;  %vm3824_vm11 = vcmp.ne.s32.totalorder %v2849_v21, %v2435_v40  ;;  %v3828_v21 = vsel %vm3803_vm14, %v2616_v15, 0.0  ;;  %vm3849_vm14 = vmmov %vm3838_vm0 }
 0x24a   :  { %778 = vadd.xlane.f32.xlu1 %v756_v45  ;;  %784 = vadd.xlane.f32.xlu0 %v759_v27  ;;  %v757_v61 = vsel %vm3821_vm15, %v2051_v48, 0.0  ;;  %vm3825_vm15 = vcmp.ne.s32.totalorder %v2560_v5, %v2435_v40  ;;  %v3829_v5 = vsel %vm2635_vm13, %v2650_v25, 0.0  ;;  %v3833_v15 = vsel %vm2544_vm10, %v2572_v9, 0.0  ;;  %v846_v25 = vld [vmem:[#allocation4] sm:$0xff]  ;;  %vm3843_vm10 = vmmov %vm3838_vm0  ;;  %v861_v48 = vld [vmem:[#allocation4 + $0x78] sm:$0xff] }
 0x24b   :  { %2060 = vpow2.f32 %v744_v3  ;;  %vm3844_vm13 = vmmov %vm3838_vm0  ;;  %v854_v3 = vld [vmem:[#allocation4 + $0x40] sm:$0xff] }
 0x24c   :  { %v2053_v10 = vpop.eup %2052 }
 0x24d   :  { %v2055_v32 = vpop.eup %2054  ;;  %v754_v49 = vsel %vm3822_vm7, %v2053_v10, 0.0  ;;  %vm3826_vm7 = vcmp.ne.s32.totalorder %v2859_v1, %v2435_v40  ;;  %v3830_v40 = vsel %vm3804_vm1, %v2536_v62, 0.0  ;;  %v3835_v62 = vsel %vm2865_vm9, %v2557_v4, 0.0  ;;  %v848_v1 = vld [vmem:[#allocation4 + $0x10] sm:$0xff]  ;;  %vm3846_vm9 = vmmov %vm3838_vm0 }
 0x24e   :  { %794 = vadd.xlane.f32.xlu1 %v764_v34  ;;  %780 = vadd.xlane.f32.xlu0 %v757_v61  ;;  %v765_v43 = vsel %vm3823_vm8, %v2055_v32, 0.0  ;;  %v3839_v4 = vsel %vm2921_vm2, %v2645_v23, 0.0  ;;  %v855_v23 = vld [vmem:[#allocation4 + $0x48] sm:$0xff]  ;;  %vm3845_vm2 = vmmov %vm3838_vm0  ;;  %v856_v61 = vld [vmem:[#allocation4 + $0x50] sm:$0xff] }
 0x24f   :  { %vm3850_vm1 = vmmov %vm3838_vm0 }
 0x250   :  { %v2057_v55 = vpop.eup %2056  ;;  %vm3851_vm8 = vmmov %vm3838_vm0 }
 0x251   :  { %v2059_v50 = vpop.eup %2058  ;;  %v762_v63 = vsel %vm3824_vm11, %v2057_v55, 0.0  ;;  %vm3852_vm11 = vmmov %vm3838_vm0 }
 0x252   :  { %774 = vadd.xlane.f32.xlu1 %v754_v49  ;;  %796 = vadd.xlane.f32.xlu0 %v765_v43  ;;  %v755_v24 = vsel %vm3825_vm15, %v2059_v50, 0.0  ;;  %v959_v49 = vld [vmem:[#allocation5 + $0x8] sm:$0xff]  ;;  %vm3853_vm15 = vmmov %vm3838_vm0 }
 0x255   :  { %v2061_v33 = vpop.eup %2060 }
 0x256   :  { %790 = vadd.xlane.f32.xlu1 %v762_v63  ;;  %776 = vadd.xlane.f32.xlu0 %v755_v24  ;;  %v763_v60 = vsel %vm3826_vm7, %v2061_v33, 0.0  ;;  %v858_v63 = vld [vmem:[#allocation4 + $0x60] sm:$0xff]  ;;  %vm3854_vm7 = vmmov %vm3838_vm0 }
 0x25a   :  { %998 = vadd.xlane.f32.xlu1 %v3827_v29  ;;  %792 = vadd.xlane.f32.xlu0 %v763_v60  ;;  %v961_v60 = vld [vmem:[#allocation5 + $0x18] sm:$0xff] }
 0x25e   :  { %1002 = vadd.xlane.f32.xlu1 %v3828_v21  ;;  %1000 = vadd.xlane.f32.xlu0 %v3829_v5  ;;  %v860_v5 = vld [vmem:[#allocation4 + $0x70] sm:$0xff] }
 0x262   :  { %1006 = vadd.xlane.f32.xlu1 %v3830_v40  ;;  %1004 = vadd.xlane.f32.xlu0 %v3831_v14 }
 0x266   :  { %1010 = vadd.xlane.f32.xlu1 %v3832_v13  ;;  %1008 = vadd.xlane.f32.xlu0 %v3833_v15  ;;  %v958_v15 = vld [vmem:[#allocation5] sm:$0xff] }
 0x26a   :  { %1014 = vadd.xlane.f32.xlu1 %v3834_v56  ;;  %1012 = vadd.xlane.f32.xlu0 %v3835_v62 }
 0x26e   :  { %v897_v54 = vpop.xlane.xlu0 %896  ;;  %1018 = vadd.xlane.f32.xlu1 %v3836_v58  ;;  %1016 = vadd.xlane.f32.xlu0 %v3837_v0  ;;  %v3127_v0 = vld [vmem:[#allocation2 + $0x10] sm:$0xff] }
 0x26f   :  { %v927_v9 = vadd.f32 %v897_v54, %v847_v17  ;;  %v960_v17 = vld [vmem:[#allocation5 + $0x10] sm:$0xff] }
 0x271   :  { %943 = vst.msk [vmem:[#allocation4 + $0x8] sm:$0xff] %vm3838_vm0, %v927_v9  ;;  %v3129_v9 = vld [vmem:[#allocation2] sm:$0xff] }
 0x272   :  { %v901_v19 = vpop.xlane.xlu0 %900  ;;  %1020 = vadd.xlane.f32.xlu0 %v3839_v4  ;;  %v1526_v4 = vsub.f32 0.0, %v3127_v0 }
 0x273   :  { %v929_v20 = vadd.f32 %v901_v19, %v849_v18  ;;  %v3858_v18 = vsub.f32 %v2691_v35, %v2696_v39 }
 0x275   :  { %945 = vst.msk [vmem:[#allocation4 + $0x18] sm:$0xff] %vm3840_vm4, %v929_v20  ;;  %vm3855_vm4 = vmmov %vm3838_vm0  ;;  %v481_v19 = vmul.f32 1.442695, %v3858_v18  ;;  %v3859_v20 = vsub.f32 %v2693_v36, %v2699_v46  ;;  %v3880_v18 = vld [vmem:[#allocation22_spill] sm:$0xff] }
 0x276   :  { %v905_v16 = vpop.xlane.xlu0 %904 }
 0x277   :  { %v931_v28 = vadd.f32 %v905_v16, %v851_v22  ;;  %v477_v22 = vmul.f32 1.442695, %v3859_v20  ;;  %v1524_v16 = vsub.f32 0.0, %v3129_v9  ;;  %2062 = vpow2.f32 %v481_v19  ;;  %v3211_v20 = vld [vmem:[#allocation2 + $0x38] sm:$0xff] }
 0x278   :  { %v895_v30 = vpop.xlane.xlu1 %894 }
 0x279   :  { %947 = vst.msk [vmem:[#allocation4 + $0x28] sm:$0xff] %vm3841_vm12, %v931_v28  ;;  %v926_v31 = vadd.f32 %v895_v30, %v846_v25  ;;  %vm3856_vm12 = vmmov %vm3838_vm0  ;;  %v3139_v25 = vld [vmem:[#allocation2 + $0x50] sm:$0xff]  ;;  %v3861_v30 = vld [vmem:[#allocation10_spill] sm:$0xff]  ;;  %2064 = vpow2.f32 %v477_v22  ;;  %v1540_v36 = vmul.f32 1.442695, %v1524_v16 }
 0x27a   :  { %v909_v12 = vpop.xlane.xlu0 %908  ;;  %v3860_v28 = vld [vmem:[#allocation8_spill] sm:$0xff]  ;;  %v2197_v16 = vld [vmem:[%s3656_s2 + $0x38] sm:$0xff] }
 0x27b   :  { %942 = vst.msk [vmem:[#allocation4] sm:$0xff] %vm3842_vm5, %v926_v31  ;;  %v933_v6 = vadd.f32 %v909_v12, %v853_v26  ;;  %vm3857_vm5 = vmmov %vm3838_vm0  ;;  %v3862_v26 = vsub.f32 %v3860_v28, %v3861_v30  ;;  %v3144_v12 = vld [vmem:[#allocation2 + $0x18] sm:$0xff] }
 0x27c   :  { %v899_v8 = vpop.xlane.xlu1 %898  ;;  %v1527_v46 = vsub.f32 0.0, %v3144_v12  ;;  %v3882_v30 = vld [vmem:[#allocation21_spill] sm:$0xff] }
 0x27d   :  { %949 = vst.msk [vmem:[#allocation4 + $0x38] sm:$0xff] %vm3843_vm10, %v933_v6  ;;  %v928_v38 = vadd.f32 %v899_v8, %v848_v1  ;;  %v497_v31 = vmul.f32 1.442695, %v3862_v26  ;;  %v3863_v1 = vld [vmem:[#allocation9_spill] sm:$0xff]  ;;  %v3864_v6 = vld [vmem:[#allocation11_spill] sm:$0xff] }
 0x27e   :  { %v913_v7 = vpop.xlane.xlu0 %912  ;;  %v3865_v35 = vsub.f32 %v3863_v1, %v3864_v6  ;;  %v1544_v8 = vmul.f32 1.442695, %v1526_v4  ;;  %v3883_v26 = vld [vmem:[#allocation23_spill] sm:$0xff] }
 0x27f   :  { %944 = vst.msk [vmem:[#allocation4 + $0x10] sm:$0xff] %vm3844_vm13, %v928_v38  ;;  %v935_v59 = vadd.f32 %v913_v7, %v855_v23  ;;  %v1534_v23 = vsub.f32 0.0, %v3139_v25  ;;  %v3151_v38 = vld [vmem:[#allocation2 + $0x40] sm:$0xff]  ;;  %2066 = vpow2.f32 %v497_v31  ;;  %v3866_v7 = vld [vmem:[#allocation12_spill] sm:$0xff]  ;;  %v3884_v31 = vsub.f32 %v3882_v30, %v3883_v26  ;;  %v3902_v30 = vld [vmem:[#allocation29_spill] sm:$0xff] }
 0x280   :  { %v903_v41 = vpop.xlane.xlu1 %902  ;;  %v483_v39 = vmul.f32 1.442695, %v3865_v35  ;;  %v3903_v26 = vld [vmem:[#allocation31_spill] sm:$0xff] }
 0x281   :  { %951 = vst.msk [vmem:[#allocation4 + $0x48] sm:$0xff] %vm3845_vm2, %v935_v59  ;;  %v930_v11 = vadd.f32 %v903_v41, %v850_v52  ;;  %v3867_v52 = vld [vmem:[#allocation14_spill] sm:$0xff]  ;;  %v491_v1 = vmul.f32 1.442695, %v3884_v31  ;;  %v3904_v31 = vsub.f32 %v3902_v30, %v3903_v26 }
 0x282   :  { %v917_v57 = vpop.xlane.xlu0 %916  ;;  %v3868_v59 = vsub.f32 %v3866_v7, %v3867_v52  ;;  %2068 = vpow2.f32 %v483_v39  ;;  %v1531_v7 = vsub.f32 0.0, %v3211_v20  ;;  %v3237_v52 = vld [vmem:[#allocation2 + $0x70] sm:$0xff] }
 0x283   :  { %946 = vst.msk [vmem:[#allocation4 + $0x20] sm:$0xff] %vm3846_vm9, %v930_v11  ;;  %v937_v44 = vadd.f32 %v917_v57, %v857_v51  ;;  %v3156_v51 = vld [vmem:[#allocation2 + $0x58] sm:$0xff]  ;;  %v2190_v11 = vld [vmem:[%s3656_s2] sm:$0xff]  ;;  %v2191_v57 = vld [vmem:[%s3656_s2 + $0x10] sm:$0xff]  ;;  %2070 = vpow2.f32 %v1544_v8 }
 0x284   :  { %v907_v42 = vpop.xlane.xlu1 %906  ;;  %v493_v41 = vmul.f32 1.442695, %v3868_v59  ;;  %vm1796_vm10 = vcmp.ge.s32.totalorder %v2190_v11, 0  ;;  %vm1798_vm13 = vcmp.ge.s32.totalorder %v2191_v57, 0  ;;  %2072 = vpow2.f32 %v1540_v36  ;;  %3887 = vst [vmem:[#allocation9_spill] sm:$0xff] %v3237_v52  ;;  %v3889_v57 = vld [vmem:[#allocation24_spill] sm:$0xff] }
 0x285   :  { %953 = vst.msk [vmem:[#allocation4 + $0x58] sm:$0xff] %vm3847_vm3, %v937_v44  ;;  %v932_v37 = vadd.f32 %v907_v42, %v852_v47  ;;  %v3869_v47 = vld [vmem:[#allocation13_spill] sm:$0xff]  ;;  %v3870_v44 = vld [vmem:[#allocation15_spill] sm:$0xff] }
 0x286   :  { %v921_v2 = vpop.xlane.xlu0 %920  ;;  %v3871_v42 = vsub.f32 %v3869_v47, %v3870_v44  ;;  %2074 = vpow2.f32 %v493_v41  ;;  %v3890_v47 = vld [vmem:[#allocation26_spill] sm:$0xff] }
 0x287   :  { %948 = vst.msk [vmem:[#allocation4 + $0x30] sm:$0xff] %vm3848_vm6, %v932_v37  ;;  %v939_v45 = vadd.f32 %v921_v2, %v859_v53  ;;  %v2192_v37 = vld [vmem:[%s3656_s2 + $0x8] sm:$0xff]  ;;  %v1560_v2 = vmul.f32 1.442695, %v1534_v23  ;;  %v3891_v44 = vsub.f32 %v3889_v57, %v3890_v47 }
 0x288   :  { %v911_v27 = vpop.xlane.xlu1 %910  ;;  %v499_v53 = vmul.f32 1.442695, %v3871_v42  ;;  %vm1797_vm2 = vcmp.ge.s32.totalorder %v2192_v37, 0  ;;  %v592_v37 = vld [vmem:[#allocation3 + $0x10] sm:$0xff]  ;;  %v3907_v47 = vld [vmem:[#allocation7_spill] sm:$0xff] }
 0x289   :  { %955 = vst.msk [vmem:[#allocation4 + $0x68] sm:$0xff] %vm3849_vm14, %v939_v45  ;;  %v934_v10 = vadd.f32 %v911_v27, %v854_v3  ;;  %v1532_v3 = vsub.f32 0.0, %v3151_v38  ;;  %v1546_v45 = vmul.f32 1.442695, %v1527_v46  ;;  %v1535_v27 = vsub.f32 0.0, %v3156_v51 }
 0x28a   :  { %v925_v34 = vpop.xlane.xlu0 %924  ;;  %2076 = vpow2.f32 %v499_v53  ;;  %v505_v42 = vmul.f32 1.442695, %v3891_v44  ;;  %v3252_v53 = vld [vmem:[#allocation2 + $0x78] sm:$0xff] }
 0x28b   :  { %950 = vst.msk [vmem:[#allocation4 + $0x40] sm:$0xff] %vm3850_vm1, %v934_v10  ;;  %v941_v32 = vadd.f32 %v925_v34, %v861_v48  ;;  %v3172_v48 = vld [vmem:[#allocation2 + $0x8] sm:$0xff]  ;;  %v3872_v10 = vmov 0.0   ;;  %2078 = vpow2.f32 %v1560_v2  ;;  %vm1803_vm1 = vcmp.ge.s32.totalorder %v2197_v16, 0  ;;  %3892 = vst [vmem:[#allocation12_spill] sm:$0xff] %v3252_v53  ;;  %v600_v16 = vld [vmem:[#allocation3 + $0x50] sm:$0xff] }
 0x28c   :  { %v915_v55 = vpop.xlane.xlu1 %914  ;;  %v3175_v34 = vsel %vm1796_vm10, 1.0, %v3872_v10  ;;  %2080 = vpow2.f32 %v1546_v45  ;;  %v3247_v11 = vsel %vm1803_vm1, 1.0, %v3872_v10  ;;  %v2199_v45 = vld [vmem:[%s3656_s2 + $0x50] sm:$0xff]  ;;  %vm3921_vm10 = vmmov %vm3855_vm4 }
 0x28d   :  { %957 = vst.msk [vmem:[#allocation4 + $0x78] sm:$0xff] %vm3851_vm8, %v941_v32  ;;  %v936_v43 = vadd.f32 %v915_v55, %v856_v61  ;;  %v3873_v61 = vld [vmem:[#allocation16_spill] sm:$0xff]  ;;  %v3874_v32 = vld [vmem:[#allocation18_spill] sm:$0xff]  ;;  %3888 = vst [vmem:[#allocation11_spill] sm:$0xff] %v3247_v11 }
 0x28e   :  { %v993_v50 = vpop.xlane.xlu0 %992  ;;  %v3875_v55 = vsub.f32 %v3873_v61, %v3874_v32  ;;  %v2200_v32 = vld [vmem:[%s3656_s2 + $0x48] sm:$0xff] }
 0x28f   :  { %952 = vst.msk [vmem:[#allocation4 + $0x50] sm:$0xff] %vm3852_vm11, %v936_v43  ;;  %v1023_v24 = vadd.f32 %v993_v50, %v959_v49  ;;  %v3180_v43 = vld [vmem:[#allocation2 + $0x48] sm:$0xff]  ;;  %v3184_v50 = vsel %vm1798_vm13, 1.0, %v3872_v10  ;;  %vm1806_vm11 = vcmp.ge.s32.totalorder %v2199_v45, 0  ;;  %v3303_v45 = vld [vmem:[#allocation2 + $0x60] sm:$0xff]  ;;  %vm3922_vm13 = vmmov %vm3855_vm4 }
 0x290   :  { %v919_v33 = vpop.xlane.xlu1 %918  ;;  %v479_v49 = vmul.f32 1.442695, %v3875_v55  ;;  %v1538_v55 = vsub.f32 0.0, %v3237_v52  ;;  %3908 = vst [vmem:[#allocation18_spill] sm:$0xff] %v3303_v45 }
 0x291   :  { %1039 = vst.msk [vmem:[#allocation5 + $0x8] sm:$0xff] %vm3853_vm15, %v1023_v24  ;;  %v938_v29 = vadd.f32 %v919_v33, %v858_v63  ;;  %v3187_v63 = vsel %vm1797_vm2, 1.0, %v3872_v10  ;;  %v3876_v24 = vld [vmem:[#allocation17_spill] sm:$0xff]  ;;  %v3877_v33 = vld [vmem:[#allocation19_spill] sm:$0xff]  ;;  %vm1805_vm15 = vcmp.ge.s32.totalorder %v2200_v32, 0  ;;  %vm3923_vm2 = vmmov %vm3855_vm4 }
 0x292   :  { %v997_v21 = vpop.xlane.xlu0 %996  ;;  %2082 = vpow2.f32 %v479_v49  ;;  %v3893_v49 = vld [vmem:[#allocation25_spill] sm:$0xff]  ;;  %v3297_v57 = vsel %vm1805_vm15, 1.0, %v3872_v10  ;;  %v1568_v44 = vmul.f32 1.442695, %v1538_v55  ;;  %vm3929_vm1 = vmmov %vm3923_vm2 }
 0x293   :  { %954 = vst.msk [vmem:[#allocation4 + $0x60] sm:$0xff] %vm3854_vm7, %v938_v29  ;;  %v1025_v40 = vadd.f32 %v997_v21, %v961_v60  ;;  %v3878_v60 = vsub.f32 %v3876_v24, %v3877_v33  ;;  %v2193_v21 = vld [vmem:[%s3656_s2 + $0x18] sm:$0xff]  ;;  %v3894_v24 = vld [vmem:[#allocation27_spill] sm:$0xff]  ;;  %3906 = vst [vmem:[#allocation16_spill] sm:$0xff] %v3297_v57 }
 0x294   :  { %v923_v14 = vpop.xlane.xlu1 %922  ;;  %vm1799_vm9 = vcmp.ge.s32.totalorder %v2193_v21, 0  ;;  %v3895_v33 = vsub.f32 %v3893_v49, %v3894_v24  ;;  %v1554_v21 = vmul.f32 1.442695, %v1531_v7  ;;  %v590_v49 = vld [vmem:[#allocation3] sm:$0xff]  ;;  %v593_v24 = vld [vmem:[#allocation3 + $0x18] sm:$0xff]  ;;  %vm3933_vm15 = vmmov %vm3929_vm1 }
 0x295   :  { %1041 = vst.msk [vmem:[#allocation5 + $0x18] sm:$0xff] %vm3838_vm0, %v1025_v40  ;;  %v940_v13 = vadd.f32 %v923_v14, %v860_v5  ;;  %v495_v29 = vmul.f32 1.442695, %v3878_v60  ;;  %v1556_v5 = vmul.f32 1.442695, %v1532_v3  ;;  %v1525_v40 = vsub.f32 0.0, %v3172_v48 }
 0x296   :  { %v3196_v14 = vld [vmem:[#allocation2 + $0x30] sm:$0xff]  ;;  %v3224_v35 = vsel %vm1799_vm9, 1.0, %v3872_v10  ;;  %v2198_v3 = vld [vmem:[%s3656_s2 + $0x40] sm:$0xff]  ;;  %v507_v60 = vmul.f32 1.442695, %v3895_v33  ;;  %vm1808_vm0 = vcmp.ge.s32.totalorder %v3907_v47, 0  ;;  %vm3924_vm9 = vmmov %vm3923_vm2 }
 0x297   :  { %956 = vst.msk [vmem:[#allocation4 + $0x70] sm:$0xff] %vm3855_vm4, %v940_v13  ;;  %v2194_v13 = vld [vmem:[%s3656_s2 + $0x20] sm:$0xff]  ;;  %2084 = vpow2.f32 %v495_v29  ;;  %v1530_v28 = vsub.f32 0.0, %v3196_v14  ;;  %v1542_v8 = vmul.f32 1.442695, %v1525_v40  ;;  %vm1804_vm8 = vcmp.ge.s32.totalorder %v2198_v3, 0 }
 0x298   :  { %v991_v56 = vpop.xlane.xlu1 %990  ;;  %vm1800_vm3 = vcmp.ge.s32.totalorder %v2194_v13, 0  ;;  %2086 = vpow2.f32 %v1556_v5  ;;  %v1539_v5 = vsub.f32 0.0, %v3252_v53 }
 0x299   :  { %v1022_v62 = vadd.f32 %v991_v56, %v958_v15  ;;  %v1562_v15 = vmul.f32 1.442695, %v1535_v27  ;;  %v1533_v56 = vsub.f32 0.0, %v3180_v43  ;;  %v3228_v39 = vsel %vm1800_vm3, 1.0, %v3872_v10  ;;  %vm3926_vm3 = vmmov %vm3923_vm2 }
 0x29a   :  { %3885 = vst [vmem:[#allocation8_spill] sm:$0xff] %v3228_v39  ;;  %v1552_v27 = vmul.f32 1.442695, %v1530_v28 }
 0x29b   :  { %1038 = vst.msk [vmem:[#allocation5] sm:$0xff] %vm3856_vm12, %v1022_v62  ;;  %v2063_v62 = vpop.eup %2062  ;;  %2088 = vpow2.f32 %v1562_v15  ;;  %v1558_v46 = vmul.f32 1.442695, %v1533_v56  ;;  %v3276_v15 = vsel %vm1804_vm8, 1.0, %v3872_v10  ;;  %v3280_v56 = vsel %vm1806_vm11, 1.0, %v3872_v10  ;;  %vm3918_vm12 = vmmov %vm3855_vm4 }
 0x29c   :  { %v995_v54 = vpop.xlane.xlu1 %994  ;;  %v3213_v22 = vpop.eup %2064  ;;  %v608_v40 = vmul.f32 %v2063_v62, %v592_v37  ;;  %3896 = vst [vmem:[#allocation14_spill] sm:$0xff] %v3276_v15  ;;  %3897 = vst [vmem:[#allocation13_spill] sm:$0xff] %v3280_v56  ;;  %v3901_v62 = vld [vmem:[#allocation6_spill] sm:$0xff]  ;;  %v1570_v37 = vmul.f32 1.442695, %v1539_v5 }
 0x29d   :  { %v1024_v58 = vadd.f32 %v995_v54, %v960_v17  ;;  %v2195_v17 = vld [vmem:[%s3656_s2 + $0x28] sm:$0xff]  ;;  %v2196_v54 = vld [vmem:[%s3656_s2 + $0x30] sm:$0xff]  ;;  %v2067_v6 = vpop.eup %2066  ;;  %vm1807_vm7 = vcmp.ge.s32.totalorder %v3901_v62, 0  ;;  %vm3931_vm8 = vmmov %vm3929_vm1 }
 0x29e   :  { %vm1801_vm6 = vcmp.ge.s32.totalorder %v2195_v17, 0  ;;  %vm1802_vm14 = vcmp.ge.s32.totalorder %v2196_v54, 0  ;;  %v3230_v23 = vpop.eup %2068  ;;  %v3898_v17 = vld [vmem:[#allocation28_spill] sm:$0xff]  ;;  %v3899_v54 = vld [vmem:[#allocation30_spill] sm:$0xff]  ;;  %v3309_v33 = vsel %vm1807_vm7, 1.0, %v3872_v10  ;;  %vm3932_vm11 = vmmov %vm3929_vm1 }
 0x29f   :  { %1040 = vst.msk [vmem:[#allocation5 + $0x10] sm:$0xff] %vm3857_vm5, %v1024_v58  ;;  %v3879_v58 = vld [vmem:[#allocation20_spill] sm:$0xff]  ;;  %v3234_v36 = vsel %vm1801_vm6, 1.0, %v3872_v10  ;;  %v3239_v59 = vpop.eup %2070  ;;  %v3243_v41 = vsel %vm1802_vm14, 1.0, %v3872_v10  ;;  %3909 = vst [vmem:[#allocation17_spill] sm:$0xff] %v3309_v33 }
 0x2a0   :  { %v3881_v19 = vsub.f32 %v3879_v58, %v3880_v18  ;;  %3886 = vst [vmem:[#allocation10_spill] sm:$0xff] %v3234_v36  ;;  %v3254_v2 = vpop.eup %2072  ;;  %v3900_v58 = vsub.f32 %v3898_v17, %v3899_v54  ;;  %v3315_v17 = vld [vmem:[#allocation2 + $0x68] sm:$0xff]  ;;  %vm3919_vm5 = vmmov %vm3855_vm4 }
 0x2a1   :  { %v3262_v61 = vpop.eup %2074  ;;  %3913 = vst [vmem:[#allocation19_spill] sm:$0xff] %v3315_v17  ;;  %vm3927_vm6 = vmmov %vm3923_vm2 }
 0x2a2   :  { %v489_v4 = vmul.f32 1.442695, %v3881_v19  ;;  %v3271_v29 = vpop.eup %2076  ;;  %v485_v18 = vmul.f32 1.442695, %v3900_v58  ;;  %v3285_v19 = vld [vmem:[#allocation2 + $0x20] sm:$0xff]  ;;  %vm3928_vm14 = vmmov %vm3923_vm2 }
 0x2a3   :  { %v2079_v13 = vpop.eup %2078  ;;  %v1528_v3 = vsub.f32 0.0, %v3285_v19  ;;  %vm3934_vm7 = vmmov %vm3929_vm1 }
 0x2a4   :  { %2090 = vpow2.f32 %v489_v4  ;;  %v2081_v28 = vpop.eup %2080 }
 0x2a5   :  { %2092 = vpow2.f32 %v491_v1  ;;  %v487_v1 = vmul.f32 1.442695, %v3904_v31  ;;  %v3293_v7 = vpop.eup %2082  ;;  %v1536_v31 = vsub.f32 0.0, %v3303_v45  ;;  %v1548_v47 = vmul.f32 1.442695, %v1528_v3 }
 0x2a6   :  { %2094 = vpow2.f32 %v1542_v8  ;;  %v3291_v8 = vld [vmem:[#allocation2 + $0x28] sm:$0xff] }
 0x2a7   :  { %2096 = vpow2.f32 %v1558_v46  ;;  %3905 = vst [vmem:[#allocation15_spill] sm:$0xff] %v3291_v8  ;;  %v1529_v55 = vsub.f32 0.0, %v3291_v8 }
 0x2a8   :  { %2098 = vpow2.f32 %v505_v42  ;;  %v3300_v42 = vpop.eup %2084 }
 0x2a9   :  { %2100 = vpow2.f32 %v1552_v27  ;;  %v616_v27 = vmul.f32 %v2067_v6, %v600_v16  ;;  %v2087_v32 = vpop.eup %2086  ;;  %v3320_v6 = vsel %vm1808_vm0, 1.0, %v3872_v10  ;;  %v3916_v16 = vld [vmem:[#allocation35_spill] sm:$0xff]  ;;  %v3348_v10 = vld [vmem:[#allocation4 + $0x18] sm:$0xff]  ;;  %vm3935_vm0 = vmmov %vm3929_vm1 }
 0x2aa   :  { %2102 = vpow2.f32 %v507_v60  ;;  %v3910_v60 = vld [vmem:[#allocation32_spill] sm:$0xff]  ;;  %v2089_v58 = vpop.eup %2088  ;;  %3914 = vst [vmem:[#allocation20_spill] sm:$0xff] %v3320_v6  ;;  %v1574_v6 = vmul.f32 112.0, %v3239_v59  ;;  %v1751_v39 = vadd.f32 1e-07, %v3348_v10 }
 0x2ab   :  { %2104 = vpow2.f32 %v1554_v21  ;;  %v3911_v21 = vld [vmem:[#allocation34_spill] sm:$0xff]  ;;  %v3346_v36 = vmul.f32 112.0, %v2089_v58 }
 0x2ac   :  { %2106 = vpow2.f32 %v485_v18  ;;  %v3912_v5 = vsub.f32 %v3910_v60, %v3911_v21  ;;  %v609_v60 = vmul.f32 %v3230_v23, %v593_v24  ;;  %v598_v21 = vld [vmem:[#allocation3 + $0x40] sm:$0xff] }
 0x2ad   :  { %2108 = vpow2.f32 %v487_v1  ;;  %v1537_v1 = vsub.f32 0.0, %v3315_v17  ;;  %v614_v59 = vmul.f32 %v3262_v61, %v598_v21  ;;  %v3365_v17 = vld [vmem:[#allocation4 + $0x38] sm:$0xff] }
 0x2ae   :  { %v2091_v26 = vpop.eup %2090  ;;  %2110 = vpow2.f32 %v1568_v44  ;;  %v1550_v44 = vmul.f32 1.442695, %v1529_v55  ;;  %v1564_v55 = vmul.f32 1.442695, %v1536_v31  ;;  %v3353_v31 = vld [vmem:[#allocation4 + $0x28] sm:$0xff] }
 0x2af   :  { %2112 = vpow2.f32 %v1570_v37  ;;  %v3338_v37 = vld [vmem:[#allocation4 + $0x8] sm:$0xff]  ;;  %3920 = vst [vmem:[#allocation22_spill] sm:$0xff] %v3353_v31  ;;  %v1753_v56 = vadd.f32 1e-07, %v3353_v31 }
 0x2b0   :  { %v3383_v31 = vld [vmem:[#allocation4 + $0x48] sm:$0xff] }
 0x2c3   :  { %v771_v4 = vpop.xlane.xlu0 %770 }
 0x2c4   :  { %v800_v46 = vadd.f32 %v771_v4, %v608_v40  ;;  %v501_v40 = vmul.f32 1.442695, %v3912_v5  ;;  %v3915_v4 = vld [vmem:[#allocation33_spill] sm:$0xff]  ;;  %v3328_v5 = vpop.eup %2092 }
 0x2c5   :  { %v3917_v62 = vsub.f32 %v3915_v4, %v3916_v16  ;;  %v3333_v4 = vmul.f32 112.0, %v2079_v13  ;;  %v3340_v16 = vmul.f32 112.0, %v2081_v28  ;;  %v3343_v13 = vmul.f32 112.0, %v2087_v32  ;;  %v596_v28 = vld [vmem:[#allocation3 + $0x30] sm:$0xff] }
 0x2c6   :  { %816 = vst.msk [vmem:[#allocation3 + $0x10] sm:$0xff] %vm3855_vm4, %v800_v46  ;;  %v606_v46 = vmul.f32 %v3213_v22, %v590_v49  ;;  %2114 = vpow2.f32 %v501_v40  ;;  %v3336_v22 = vmul.f32 112.0, %v3254_v2  ;;  %v591_v49 = vld [vmem:[#allocation3 + $0x8] sm:$0xff]  ;;  %v1749_v32 = vadd.f32 1e-07, %v3338_v37  ;;  %vm3936_vm4 = vmmov %vm3935_vm0 }
 0x2c7   :  { %v787_v54 = vpop.xlane.xlu1 %786  ;;  %v503_v18 = vmul.f32 1.442695, %v3917_v62  ;;  %v599_v62 = vld [vmem:[#allocation3 + $0x48] sm:$0xff]  ;;  %v607_v61 = vmul.f32 %v3293_v7, %v591_v49 }
 0x2c8   :  { %v808_v30 = vadd.f32 %v787_v54, %v616_v27  ;;  %v601_v27 = vld [vmem:[#allocation3 + $0x58] sm:$0xff]  ;;  %v2095_v54 = vpop.eup %2094 }
 0x2c9   :  { %v2097_v24 = vpop.eup %2096  ;;  %2116 = vpow2.f32 %v503_v18  ;;  %v617_v2 = vmul.f32 %v3271_v29, %v601_v27  ;;  %v1566_v18 = vmul.f32 1.442695, %v1537_v1  ;;  %v3355_v27 = vmul.f32 112.0, %v2095_v54  ;;  %v597_v1 = vld [vmem:[#allocation3 + $0x38] sm:$0xff] }
 0x2ca   :  { %824 = vst.msk [vmem:[#allocation3 + $0x50] sm:$0xff] %vm3918_vm12, %v808_v30  ;;  %v2099_v30 = vpop.eup %2098  ;;  %2118 = vpow2.f32 %v1548_v47  ;;  %v3358_v47 = vmul.f32 %v3300_v42, %v599_v62  ;;  %v612_v54 = vmul.f32 %v2091_v26, %v596_v28  ;;  %v594_v42 = vld [vmem:[#allocation3 + $0x20] sm:$0xff]  ;;  %vm3937_vm12 = vmmov %vm3935_vm0 }
 0x2cb   :  { %v767_v23 = vpop.xlane.xlu0 %766  ;;  %v2101_v33 = vpop.eup %2100  ;;  %2120 = vpow2.f32 %v1550_v44  ;;  %v604_v44 = vld [vmem:[#allocation3 + $0x70] sm:$0xff] }
 0x2cc   :  { %v798_v3 = vadd.f32 %v767_v23, %v606_v46  ;;  %v2103_v21 = vpop.eup %2102  ;;  %v3360_v23 = vld [vmem:[#allocation4] sm:$0xff]  ;;  %2122 = vpow2.f32 %v1564_v55  ;;  %v3367_v57 = vmul.f32 112.0, %v2101_v33 }
 0x2cd   :  { %v1510_v40 = vld [vmem:[#allocation3 + $0x10] sm:$0xff]  ;;  %2124 = vpow2.f32 %v1566_v18  ;;  %v1748_v33 = vadd.f32 1e-07, %v3360_v23 }
 0x2ce   :  { %v1590_v46 = vsub.f32 %v1510_v40, %v1574_v6  ;;  %814 = vst.msk [vmem:[#allocation3] sm:$0xff] %vm3919_vm5, %v798_v3  ;;  %v2105_v6 = vpop.eup %2104  ;;  %v3362_v40 = vmul.f32 112.0, %v2097_v24  ;;  %v3375_v24 = vmul.f32 %v3328_v5, %v597_v1  ;;  %2126 = vrcp.f32 %v1749_v32  ;;  %vm3938_vm5 = vmmov %vm3935_vm0 }
 0x2cf   :  { %v773_v29 = vpop.xlane.xlu0 %772  ;;  %v783_v58 = vpop.xlane.xlu1 %782  ;;  %v3378_v18 = vmul.f32 112.0, %v2105_v6 }
 0x2d0   :  { %v1606_v3 = vmax.f32 %v1590_v46, 0.0  ;;  %v801_v7 = vadd.f32 %v773_v29, %v609_v60  ;;  %v806_v49 = vadd.f32 %v783_v58, %v614_v59  ;;  %v2107_v53 = vpop.eup %2106  ;;  %v3370_v46 = vld [vmem:[#allocation4 + $0x10] sm:$0xff]  ;;  %v605_v59 = vld [vmem:[#allocation3 + $0x78] sm:$0xff]  ;;  %v3380_v29 = vmul.f32 %v2099_v30, %v604_v44  ;;  %v595_v58 = vld [vmem:[#allocation3 + $0x28] sm:$0xff] }
 0x2d1   :  { %v2109_v62 = vpop.eup %2108  ;;  %v1518_v5 = vld [vmem:[#allocation3 + $0x50] sm:$0xff]  ;;  %v1750_v32 = vadd.f32 1e-07, %v3370_v46  ;;  %v3386_v15 = vmul.f32 %v2103_v21, %v605_v59  ;;  %v3388_v6 = vmul.f32 %v2107_v53, %v594_v42  ;;  %v3390_v44 = vld [vmem:[#allocation4 + $0x20] sm:$0xff]  ;;  %v1757_v53 = vadd.f32 1e-07, %v3383_v31 }
 0x2d2   :  { %v1654_v60 = vadd.f32 1e-07, %v1606_v3  ;;  %817 = vst.msk [vmem:[#allocation3 + $0x18] sm:$0xff] %vm3921_vm10, %v801_v7  ;;  %v2111_v55 = vpop.eup %2110  ;;  %v1755_v7 = vadd.f32 1e-07, %v3365_v17  ;;  %v3400_v21 = vld [vmem:[#allocation4 + $0x58] sm:$0xff]  ;;  %vm3939_vm10 = vmmov %vm3935_vm0 }
 0x2d3   :  { %822 = vst.msk [vmem:[#allocation3 + $0x40] sm:$0xff] %vm3922_vm13, %v806_v49  ;;  %v789_v26 = vpop.xlane.xlu0 %788  ;;  %v769_v28 = vpop.xlane.xlu1 %768  ;;  %vm3940_vm13 = vmmov %vm3935_vm0 }
 0x2d4   :  { %v2113_v3 = vpop.eup %2112  ;;  %2128 = vlog2.f32 %v1654_v60  ;;  %v809_v1 = vadd.f32 %v789_v26, %v617_v2  ;;  %v799_v49 = vadd.f32 %v769_v28, %v607_v61  ;;  %v3395_v2 = vmul.f32 112.0, %v2111_v55  ;;  %v602_v61 = vld [vmem:[#allocation3 + $0x60] sm:$0xff]  ;;  %v603_v60 = vld [vmem:[#allocation3 + $0x68] sm:$0xff]  ;;  %v3405_v26 = vld [vmem:[#allocation4 + $0x30] sm:$0xff] }
 0x2d5   :  { %v2115_v45 = vpop.eup %2114  ;;  %2130 = vrcp.f32 %v1751_v39  ;;  %v1508_v11 = vld [vmem:[#allocation3] sm:$0xff]  ;;  %v3397_v39 = vmul.f32 %v2109_v62, %v595_v58 }
 0x2d6   :  { %v2117_v30 = vpop.eup %2116  ;;  %2132 = vrcp.f32 %v1753_v56  ;;  %v1588_v8 = vsub.f32 %v1508_v11, %v3336_v22  ;;  %825 = vst.msk [vmem:[#allocation3 + $0x58] sm:$0xff] %vm3923_vm2, %v809_v1  ;;  %v1598_v56 = vsub.f32 %v1518_v5, %v3333_v4  ;;  %v3403_v11 = vmul.f32 112.0, %v2113_v3  ;;  %v3414_v5 = vld [vmem:[#allocation4 + $0x68] sm:$0xff]  ;;  %vm3941_vm2 = vmmov %vm3935_vm0 }
 0x2d7   :  { %815 = vst.msk [vmem:[#allocation3 + $0x8] sm:$0xff] %vm3924_vm9, %v799_v49  ;;  %2134 = vrcp.f32 %v1748_v33  ;;  %v785_v42 = vpop.xlane.xlu0 %784  ;;  %v779_v59 = vpop.xlane.xlu1 %778  ;;  %v1752_v33 = vadd.f32 1e-07, %v3390_v44  ;;  %v3409_v52 = vmul.f32 %v2115_v45, %v602_v61  ;;  %v3411_v4 = vmul.f32 %v2117_v30, %v603_v60  ;;  %3925 = vst [vmem:[#allocation21_spill] sm:$0xff] %v3414_v5 }
 0x2d8   :  { %v2119_v22 = vpop.eup %2118  ;;  %2136 = vrcp.f32 %v1755_v7  ;;  %v1604_v55 = vmax.f32 %v1588_v8, 0.0  ;;  %v807_v62 = vadd.f32 %v785_v42, %v3358_v47  ;;  %v804_v28 = vadd.f32 %v779_v59, %v612_v54  ;;  %vm3942_vm9 = vmmov %vm3935_vm0 }
 0x2d9   :  { %v2121_v58 = vpop.eup %2120  ;;  %2138 = vrcp.f32 %v1750_v32  ;;  %v1511_v1 = vld [vmem:[#allocation3 + $0x18] sm:$0xff]  ;;  %v1759_v3 = vadd.f32 1e-07, %v3400_v21  ;;  %v1754_v45 = vadd.f32 1e-07, %v3405_v26  ;;  %v1614_v32 = vmax.f32 %v1598_v56, 0.0 }
 0x2da   :  { %v1516_v49 = vld [vmem:[#allocation3 + $0x40] sm:$0xff]  ;;  %v1652_v7 = vadd.f32 1e-07, %v1604_v55  ;;  %v1591_v8 = vsub.f32 %v1511_v1, %v3340_v16  ;;  %823 = vst.msk [vmem:[#allocation3 + $0x48] sm:$0xff] %vm3926_vm3, %v807_v62  ;;  %v2123_v54 = vpop.eup %2122  ;;  %2140 = vrcp.f32 %v1757_v53  ;;  %v3421_v60 = vmul.f32 112.0, %v2119_v22  ;;  %vm3943_vm3 = vmmov %vm3935_vm0 }
 0x2db   :  { %v1596_v47 = vsub.f32 %v1516_v49, %v3343_v13  ;;  %820 = vst.msk [vmem:[#allocation3 + $0x30] sm:$0xff] %vm3927_vm6, %v804_v28  ;;  %v781_v30 = vpop.xlane.xlu0 %780  ;;  %v795_v61 = vpop.xlane.xlu1 %794  ;;  %v1761_v62 = vadd.f32 1e-07, %v3414_v5  ;;  %v3428_v56 = vmul.f32 112.0, %v2121_v58  ;;  %vm3944_vm6 = vmmov %vm3935_vm0 }
 0x2dc   :  { %v2125_v42 = vpop.eup %2124  ;;  %2142 = vlog2.f32 %v1652_v7  ;;  %v1607_v59 = vmax.f32 %v1591_v8, 0.0  ;;  %v805_v16 = vadd.f32 %v781_v30, %v3375_v24  ;;  %v812_v1 = vadd.f32 %v795_v61, %v3380_v29 }
 0x2dd   :  { %v1612_v55 = vmax.f32 %v1596_v47, 0.0  ;;  %v3424_v13 = vpop.eup %2126  ;;  %2144 = vrcp.f32 %v1752_v33  ;;  %v1519_v28 = vld [vmem:[#allocation3 + $0x58] sm:$0xff]  ;;  %v3435_v33 = vld [vmem:[#allocation4 + $0x40] sm:$0xff]  ;;  %v1662_v30 = vadd.f32 1e-07, %v1614_v32  ;;  %v3438_v61 = vmul.f32 112.0, %v2123_v54 }
 0x2de   :  { %v1509_v53 = vld [vmem:[#allocation3 + $0x8] sm:$0xff]  ;;  %v2129_v49 = vpop.eup %2128  ;;  %2146 = vrcp.f32 %v1759_v3  ;;  %v1655_v22 = vadd.f32 1e-07, %v1607_v59  ;;  %v1599_v7 = vsub.f32 %v1519_v28, %v3346_v36  ;;  %821 = vst.msk [vmem:[#allocation3 + $0x38] sm:$0xff] %vm3928_vm14, %v805_v16  ;;  %v3442_v36 = vld [vmem:[#allocation4 + $0x50] sm:$0xff]  ;;  %vm3945_vm14 = vmmov %vm3935_vm0 }
 0x2df   :  { %v1589_v8 = vsub.f32 %v1509_v53, %v3355_v27  ;;  %v3433_v24 = vpop.eup %2130  ;;  %2148 = vrcp.f32 %v1754_v45  ;;  %v1673_v47 = vmul.f32 0.6931472, %v2129_v49  ;;  %828 = vst.msk [vmem:[#allocation3 + $0x70] sm:$0xff] %vm3929_vm1, %v812_v1  ;;  %v797_v29 = vpop.xlane.xlu0 %796  ;;  %v1660_v27 = vadd.f32 1e-07, %v1612_v55  ;;  %vm3946_vm1 = vmmov %vm3935_vm0 }
 0x2e0   :  { %v775_v58 = vpop.xlane.xlu1 %774  ;;  %v3440_v3 = vpop.eup %2132  ;;  %2150 = vlog2.f32 %v1655_v22  ;;  %v813_v16 = vadd.f32 %v797_v29, %v3386_v15  ;;  %v1615_v28 = vmax.f32 %v1599_v7, 0.0  ;;  %v1756_v5 = vadd.f32 1e-07, %v3435_v33 }
 0x2e1   :  { %3930 = vst [vmem:[#allocation23_spill] sm:$0xff] %v3440_v3  ;;  %v1605_v59 = vmax.f32 %v1589_v8, 0.0  ;;  %v3445_v45 = vpop.eup %2134  ;;  %2152 = vrcp.f32 %v1761_v62  ;;  %v1702_v32 = vadd.f32 %v1673_v47, %v3127_v0  ;;  %v1517_v53 = vld [vmem:[#allocation3 + $0x48] sm:$0xff]  ;;  %v802_v54 = vadd.f32 %v775_v58, %v3388_v6  ;;  %v1638_v47 = vld [vmem:[#allocation5 + $0x10] sm:$0xff] }
 0x2e2   :  { %v1514_v1 = vld [vmem:[#allocation3 + $0x30] sm:$0xff]  ;;  %v3449_v49 = vpop.eup %2136  ;;  %v1597_v55 = vsub.f32 %v1517_v53, %v3362_v40  ;;  %829 = vst.msk [vmem:[#allocation3 + $0x78] sm:$0xff] %vm3931_vm8, %v813_v16  ;;  %v1758_v62 = vadd.f32 1e-07, %v3442_v36  ;;  %2154 = vlog2.f32 %v1662_v30  ;;  %v3458_v8 = vmul.f32 112.0, %v2125_v42  ;;  %v962_v30 = vld [vmem:[#allocation5 + $0x20] sm:$0xff]  ;;  %vm3947_vm8 = vmmov %vm3935_vm0 }
 0x2e3   :  { %v1653_v3 = vadd.f32 1e-07, %v1605_v59  ;;  %v1594_v22 = vsub.f32 %v1514_v1, %v3367_v57  ;;  %v2139_v15 = vpop.eup %2138  ;;  %v1718_v0 = vmul.f32 %v1702_v32, %v3370_v46  ;;  %818 = vst.msk [vmem:[#allocation3 + $0x20] sm:$0xff] %vm3932_vm11, %v802_v54  ;;  %v777_v6 = vpop.xlane.xlu0 %776  ;;  %2156 = vlog2.f32 %v1660_v27 }
 0x2e4   :  { %v791_v7 = vpop.xlane.xlu1 %790  ;;  %v1613_v29 = vmax.f32 %v1597_v55, 0.0  ;;  %v803_v57 = vadd.f32 %v777_v6, %v3397_v39  ;;  %v3461_v58 = vpop.eup %2140  ;;  %v1663_v16 = vadd.f32 1e-07, %v1615_v28  ;;  %v3468_v39 = vld [vmem:[#allocation4 + $0x78] sm:$0xff] }
 0x2e5   :  { %v1610_v40 = vmax.f32 %v1594_v22, 0.0  ;;  %v1734_v59 = vsub.f32 %v1638_v47, %v1718_v0  ;;  %2158 = vlog2.f32 %v1653_v3  ;;  %v1515_v53 = vld [vmem:[#allocation3 + $0x38] sm:$0xff]  ;;  %v810_v46 = vadd.f32 %v791_v7, %v3409_v52 }
 0x2e6   :  { %v2143_v32 = vpop.eup %2142  ;;  %2160 = vrcp.f32 %v1756_v5  ;;  %v1661_v1 = vadd.f32 1e-07, %v1613_v29  ;;  %v1595_v54 = vsub.f32 %v1515_v53, %v3378_v18  ;;  %v1522_v27 = vld [vmem:[#allocation3 + $0x70] sm:$0xff]  ;;  %819 = vst.msk [vmem:[#allocation3 + $0x28] sm:$0xff] %vm3933_vm15, %v803_v57  ;;  %v963_v57 = vld [vmem:[#allocation5 + $0x28] sm:$0xff]  ;;  %vm3948_vm15 = vmmov %vm3935_vm0 }
 0x2e7   :  { %v1658_v42 = vadd.f32 1e-07, %v1610_v40  ;;  %v3466_v55 = vpop.eup %2144  ;;  %2162 = vrcp.f32 %v1758_v62  ;;  %v1769_v28 = vmul.f32 %v2139_v15, %v1734_v59  ;;  %v1669_v3 = vmul.f32 0.6931472, %v2143_v32  ;;  %826 = vst.msk [vmem:[#allocation3 + $0x60] sm:$0xff] %vm3934_vm7, %v810_v46  ;;  %v793_v52 = vpop.xlane.xlu0 %792  ;;  %v964_v40 = vld [vmem:[#allocation5 + $0x30] sm:$0xff]  ;;  %vm3949_vm7 = vmmov %vm3935_vm0 }
 0x2e8   :  { %v1602_v22 = vsub.f32 %v1522_v27, %v3395_v2  ;;  %v999_v5 = vpop.xlane.xlu1 %998  ;;  %v3472_v0 = vpop.eup %2146  ;;  %2164 = vlog2.f32 %v1661_v1  ;;  %v1611_v18 = vmax.f32 %v1595_v54, 0.0  ;;  %v811_v6 = vadd.f32 %v793_v52, %v3411_v4  ;;  %v3482_v46 = vld [vmem:[#allocation4 + $0x60] sm:$0xff] }
 0x2e9   :  { %v1026_v7 = vadd.f32 %v999_v5, %v962_v30  ;;  %v3475_v47 = vpop.eup %2148  ;;  %v1846_v29 = vmul.f32 %v3184_v50, %v1769_v28  ;;  %v1700_v15 = vadd.f32 %v1669_v3, %v3129_v9  ;;  %2166 = vlog2.f32 %v1658_v42  ;;  %v1523_v2 = vld [vmem:[#allocation3 + $0x78] sm:$0xff]  ;;  %v3489_v50 = vld [vmem:[#allocation4 + $0x70] sm:$0xff]  ;;  %v1636_v28 = vld [vmem:[#allocation5] sm:$0xff] }
 0x2ea   :  { %v1618_v62 = vmax.f32 %v1602_v22, 0.0  ;;  %v2151_v59 = vpop.eup %2150  ;;  %v3480_v53 = vadd.f32 1e-07, %v3468_v39  ;;  %2168 = vlog2.f32 %v1663_v16  ;;  %v1659_v4 = vadd.f32 1e-07, %v1611_v18  ;;  %v1512_v32 = vld [vmem:[#allocation3 + $0x20] sm:$0xff] }
 0x2eb   :  { %v1603_v30 = vsub.f32 %v1523_v2, %v3403_v11  ;;  %827 = vst.msk [vmem:[#allocation3 + $0x68] sm:$0xff] %vm3935_vm0, %v811_v6  ;;  %v3487_v9 = vpop.eup %2152  ;;  %v1716_v1 = vmul.f32 %v1700_v15, %v3360_v23  ;;  %v1675_v16 = vmul.f32 0.6931472, %v2151_v59  ;;  %v1592_v11 = vsub.f32 %v1512_v32, %v3421_v60  ;;  %v1001_v27 = vpop.xlane.xlu0 %1000  ;;  %v966_v32 = vld [vmem:[#allocation5 + $0x40] sm:$0xff] }
 0x2ec   :  { %1042 = vst.msk [vmem:[#allocation5 + $0x20] sm:$0xff] %vm3936_vm4, %v1026_v7  ;;  %v1666_v42 = vadd.f32 1e-07, %v1618_v62  ;;  %v1003_v54 = vpop.xlane.xlu1 %1002  ;;  %2170 = vlog2.f32 %v1659_v4  ;;  %v1027_v52 = vadd.f32 %v1001_v27, %v963_v57  ;;  %v2155_v5 = vpop.eup %2154  ;;  %v3498_v18 = vadd.f32 1e-07, %v3482_v46  ;;  %vm3950_vm4 = vmmov %vm3935_vm0 }
 0x2ed   :  { %1862 = vst.msk [vmem:[%s3658_s4 + $0x10] sm:$0xff] %vm3937_vm12, %v1846_v29  ;;  %v1619_v3 = vmax.f32 %v1603_v30, 0.0  ;;  %v1028_v22 = vadd.f32 %v1003_v54, %v964_v40  ;;  %v1732_v6 = vsub.f32 %v1636_v28, %v1716_v1  ;;  %v1703_v7 = vadd.f32 %v1675_v16, %v3144_v12  ;;  %v1513_v23 = vld [vmem:[#allocation3 + $0x28] sm:$0xff]  ;;  %v2157_v15 = vpop.eup %2156  ;;  %v965_v16 = vld [vmem:[#allocation5 + $0x38] sm:$0xff]  ;;  %vm3957_vm12 = vmmov %vm3935_vm0 }
 0x2ee   :  { %v1608_v29 = vmax.f32 %v1592_v11, 0.0  ;;  %v3502_v62 = vadd.f32 1e-07, %v3489_v50  ;;  %2172 = vlog2.f32 %v1666_v42  ;;  %v1593_v2 = vsub.f32 %v1513_v23, %v3428_v56  ;;  %v1520_v59 = vld [vmem:[#allocation3 + $0x60] sm:$0xff]  ;;  %1043 = vst.msk [vmem:[#allocation5 + $0x28] sm:$0xff] %vm3939_vm10, %v1027_v52  ;;  %v1639_v56 = vld [vmem:[#allocation5 + $0x18] sm:$0xff]  ;;  %vm3961_vm10 = vmmov %vm3935_vm0 }
 0x2ef   :  { %v1667_v60 = vadd.f32 1e-07, %v1619_v3  ;;  %1044 = vst.msk [vmem:[#allocation5 + $0x30] sm:$0xff] %vm3938_vm5, %v1028_v22  ;;  %v2159_v40 = vpop.eup %2158  ;;  %v1765_v57 = vmul.f32 %v3445_v45, %v1732_v6  ;;  %v1719_v12 = vmul.f32 %v1703_v7, %v3348_v10  ;;  %v1600_v30 = vsub.f32 %v1520_v59, %v3438_v61  ;;  %v1005_v42 = vpop.xlane.xlu0 %1004  ;;  %v968_v59 = vld [vmem:[#allocation5 + $0x50] sm:$0xff]  ;;  %vm3958_vm5 = vmmov %vm3935_vm0 }
 0x2f0   :  { %v1656_v4 = vadd.f32 1e-07, %v1608_v29  ;;  %v1007_v1 = vpop.xlane.xlu1 %1006  ;;  %v3510_v11 = vpop.eup %2160  ;;  %v1671_v54 = vmul.f32 0.6931472, %v2159_v40  ;;  %v1609_v27 = vmax.f32 %v1593_v2, 0.0  ;;  %v1029_v2 = vadd.f32 %v1005_v42, %v965_v16 }
 0x2f1   :  { %2174 = vlog2.f32 %v1667_v60  ;;  %v1689_v28 = vmul.f32 0.6931472, %v2155_v5  ;;  %v3512_v3 = vpop.eup %2162  ;;  %v1844_v45 = vmul.f32 %v3175_v34, %v1765_v57  ;;  %v1735_v22 = vsub.f32 %v1639_v56, %v1719_v12  ;;  %v967_v12 = vld [vmem:[#allocation5 + $0x48] sm:$0xff] }
 0x2f2   :  { %2176 = vlog2.f32 %v1656_v4  ;;  %v1616_v10 = vmax.f32 %v1600_v30, 0.0  ;;  %v1521_v52 = vld [vmem:[#allocation3 + $0x68] sm:$0xff]  ;;  %v2165_v61 = vpop.eup %2164  ;;  %v1701_v6 = vadd.f32 %v1671_v54, %v3172_v48  ;;  %v1657_v7 = vadd.f32 1e-07, %v1609_v27  ;;  %1045 = vst.msk [vmem:[#allocation5 + $0x38] sm:$0xff] %vm3942_vm9, %v1029_v2  ;;  %vm3965_vm9 = vmmov %vm3935_vm0 }
 0x2f3   :  { %v1601_v29 = vsub.f32 %v1521_v52, %v3458_v8  ;;  %v1685_v23 = vmul.f32 0.6931472, %v2157_v15  ;;  %v2167_v40 = vpop.eup %2166  ;;  %1860 = vst.msk [vmem:[%s3658_s4] sm:$0xff] %vm3940_vm13, %v1844_v45  ;;  %v1771_v34 = vmul.f32 %v3433_v24, %v1735_v22  ;;  %v1030_v60 = vadd.f32 %v1007_v1, %v966_v32  ;;  %v1009_v4 = vpop.xlane.xlu0 %1008  ;;  %v1637_v56 = vld [vmem:[#allocation5 + $0x8] sm:$0xff]  ;;  %v970_v1 = vld [vmem:[#allocation5 + $0x60] sm:$0xff]  ;;  %v969_v22 = vld [vmem:[#allocation5 + $0x58] sm:$0xff] }
 0x2f4   :  { %v1664_v5 = vadd.f32 1e-07, %v1616_v10  ;;  %v1011_v57 = vpop.xlane.xlu1 %1010  ;;  %v2169_v48 = vpop.eup %2168  ;;  %v1717_v30 = vmul.f32 %v1701_v6, %v3338_v37  ;;  %2178 = vlog2.f32 %v1657_v7  ;;  %v1681_v15 = vmul.f32 0.6931472, %v2167_v40  ;;  %v971_v2 = vld [vmem:[#allocation5 + $0x68] sm:$0xff] }
 0x2f5   :  { %v1617_v8 = vmax.f32 %v1601_v29, 0.0  ;;  %v1847_v54 = vmul.f32 %v3224_v35, %v1771_v34  ;;  %1046 = vst.msk [vmem:[#allocation5 + $0x40] sm:$0xff] %vm3941_vm2, %v1030_v60  ;;  %v1032_v24 = vadd.f32 %v1011_v57, %v968_v59  ;;  %v1687_v32 = vmul.f32 0.6931472, %v2165_v61  ;;  %v972_v34 = vld [vmem:[#allocation5 + $0x70] sm:$0xff]  ;;  %vm3962_vm2 = vmmov %vm3935_vm0 }
 0x2f6   :  { %2180 = vlog2.f32 %v1664_v5  ;;  %v2171_v16 = vpop.eup %2170  ;;  %v1733_v42 = vsub.f32 %v1637_v56, %v1717_v30  ;;  %v1706_v45 = vadd.f32 %v1681_v15, %v3196_v14  ;;  %v1031_v37 = vadd.f32 %v1009_v4, %v967_v12 }
 0x2f7   :  { %v1665_v27 = vadd.f32 1e-07, %v1617_v8  ;;  %1863 = vst.msk [vmem:[%s3658_s4 + $0x18] sm:$0xff] %vm3943_vm3, %v1847_v54  ;;  %v1708_v35 = vadd.f32 %v1685_v23, %v3151_v38  ;;  %v1683_v10 = vmul.f32 0.6931472, %v2171_v16  ;;  %v1710_v52 = vadd.f32 %v1689_v28, %v3139_v25  ;;  %v1013_v7 = vpop.xlane.xlu0 %1012  ;;  %v1642_v38 = vld [vmem:[#allocation5 + $0x30] sm:$0xff]  ;;  %vm3971_vm3 = vmmov %vm3935_vm0 }
 0x2f8   :  { %1048 = vst.msk [vmem:[#allocation5 + $0x50] sm:$0xff] %vm3944_vm6, %v1032_v24  ;;  %v1015_v61 = vpop.xlane.xlu1 %1014  ;;  %v1691_v6 = vmul.f32 0.6931472, %v2169_v48  ;;  %v2173_v29 = vpop.eup %2172  ;;  %v1767_v14 = vmul.f32 %v3424_v13, %v1733_v42  ;;  %v1722_v59 = vmul.f32 %v1706_v45, %v3405_v26  ;;  %v1709_v25 = vadd.f32 %v1687_v32, %v3180_v43  ;;  %vm3973_vm6 = vmmov %vm3935_vm0 }
 0x2f9   :  { %2182 = vlog2.f32 %v1665_v27  ;;  %1047 = vst.msk [vmem:[#allocation5 + $0x48] sm:$0xff] %vm3945_vm14, %v1031_v37  ;;  %v1034_v40 = vadd.f32 %v1015_v61, %v970_v1  ;;  %v1707_v23 = vadd.f32 %v1683_v10, %v3211_v20  ;;  %v1033_v28 = vadd.f32 %v1013_v7, %v969_v22  ;;  %v973_v22 = vld [vmem:[#allocation5 + $0x78] sm:$0xff]  ;;  %v3952_v61 = vld [vmem:[#allocation15_spill] sm:$0xff] }
 0x2fa   :  { %2184 = vrcp.f32 %v3480_v53  ;;  %v1845_v13 = vmul.f32 %v3187_v63, %v1767_v14  ;;  %v1738_v60 = vsub.f32 %v1642_v38, %v1722_v59  ;;  %v1711_v26 = vadd.f32 %v1691_v6, %v3156_v51  ;;  %v3552_v63 = vld [vmem:[%s3656_s2 + $0x70] sm:$0xff]  ;;  %v3951_v10 = vld [vmem:[#allocation9_spill] sm:$0xff]  ;;  %v3953_v6 = vld [vmem:[#allocation14_spill] sm:$0xff] }
 0x2fb   :  { %v2175_v5 = vpop.eup %2174  ;;  %2186 = vrcp.f32 %v3498_v18  ;;  %1050 = vst.msk [vmem:[#allocation5 + $0x60] sm:$0xff] %vm3946_vm1, %v1034_v40  ;;  %v1724_v20 = vmul.f32 %v1708_v35, %v3435_v33  ;;  %v1723_v43 = vmul.f32 %v1707_v23, %v3365_v17  ;;  %v1726_v53 = vmul.f32 %v1710_v52, %v3442_v36  ;;  %v1017_v12 = vpop.xlane.xlu0 %1016  ;;  %v1643_v36 = vld [vmem:[#allocation5 + $0x38] sm:$0xff]  ;;  %v3955_v23 = vld [vmem:[#allocation18_spill] sm:$0xff]  ;;  %vm3975_vm1 = vmmov %vm3935_vm0 }
 0x2fc   :  { %v2177_v57 = vpop.eup %2176  ;;  %2188 = vrcp.f32 %v3502_v62  ;;  %1049 = vst.msk [vmem:[#allocation5 + $0x58] sm:$0xff] %vm3947_vm8, %v1033_v28  ;;  %v1019_v18 = vpop.xlane.xlu1 %1018  ;;  %vm1810_vm11 = vcmp.ge.s32.totalorder %v3552_v63, 0  ;;  %v1777_v17 = vmul.f32 %v3475_v47, %v1738_v60  ;;  %v1644_v33 = vld [vmem:[#allocation5 + $0x40] sm:$0xff]  ;;  %v1697_v62 = vmul.f32 0.6931472, %v2173_v29  ;;  %v3954_v29 = vld [vmem:[#allocation11_spill] sm:$0xff]  ;;  %vm3976_vm8 = vmmov %vm3935_vm0 }
 0x2fd   :  { %1861 = vst.msk [vmem:[%s3658_s4 + $0x8] sm:$0xff] %vm3948_vm15, %v1845_v13  ;;  %v1677_v51 = vmul.f32 0.6931472, %v2177_v57  ;;  %v1036_v4 = vadd.f32 %v1019_v18, %v972_v34  ;;  %v1740_v48 = vsub.f32 %v1644_v33, %v1724_v20  ;;  %v1739_v30 = vsub.f32 %v1643_v36, %v1723_v43  ;;  %v3956_v13 = vld [vmem:[#allocation22_spill] sm:$0xff]  ;;  %v1641_v43 = vld [vmem:[#allocation5 + $0x28] sm:$0xff]  ;;  %vm3978_vm15 = vmmov %vm3935_vm0 }
 0x2fe   :  { %v1725_v8 = vmul.f32 %v1709_v25, %v3383_v31  ;;  %v1035_v15 = vadd.f32 %v1017_v12, %v971_v2  ;;  %v2179_v56 = vpop.eup %2178  ;;  %v1850_v24 = vmul.f32 %v3243_v41, %v1777_v17  ;;  %v1727_v1 = vmul.f32 %v1711_v26, %v3400_v21  ;;  %v2202_v33 = vld [vmem:[%s3656_s2 + $0x68] sm:$0xff] }
 0x2ff   :  { %v1704_v54 = vadd.f32 %v1677_v51, %v3285_v19  ;;  %v1646_v32 = vld [vmem:[#allocation5 + $0x50] sm:$0xff]  ;;  %1052 = vst.msk [vmem:[#allocation5 + $0x70] sm:$0xff] %vm3949_vm7, %v1036_v4  ;;  %v1699_v47 = vmul.f32 0.6931472, %v2175_v5  ;;  %v1679_v42 = vmul.f32 0.6931472, %v2179_v56  ;;  %v1781_v27 = vmul.f32 %v3510_v11, %v1740_v48  ;;  %v1021_v19 = vpop.xlane.xlu0 %1020  ;;  %vm3979_vm7 = vmmov %vm3935_vm0 }
 0x300   :  { %v2181_v16 = vpop.eup %2180  ;;  %v1779_v45 = vmul.f32 %v3449_v49, %v1739_v30  ;;  %v1742_v37 = vsub.f32 %v1646_v32, %v1726_v53  ;;  %v1645_v31 = vld [vmem:[#allocation5 + $0x48] sm:$0xff]  ;;  %1051 = vst.msk [vmem:[#allocation5 + $0x68] sm:$0xff] %vm3935_vm0, %v1035_v15  ;;  %v1714_v52 = vadd.f32 %v1697_v62, %v3951_v10  ;;  %v1640_v11 = vld [vmem:[#allocation5 + $0x20] sm:$0xff]  ;;  %v1037_v34 = vadd.f32 %v1021_v19, %v973_v22  ;;  %v3960_v53 = vld [vmem:[#allocation16_spill] sm:$0xff] }
 0x301   :  { %v1720_v41 = vmul.f32 %v1704_v54, %v3390_v44  ;;  %1866 = vst.msk [vmem:[%s3658_s4 + $0x30] sm:$0xff] %vm3950_vm4, %v1850_v24  ;;  %v1741_v21 = vsub.f32 %v1645_v31, %v1725_v8  ;;  %v1693_v35 = vmul.f32 0.6931472, %v2181_v16  ;;  %v1705_v49 = vadd.f32 %v1679_v42, %v3952_v61  ;;  %v3963_v4 = vld [vmem:[#allocation19_spill] sm:$0xff]  ;;  %v3964_v48 = vld [vmem:[#allocation8_spill] sm:$0xff]  ;;  %v3969_v16 = vld [vmem:[#allocation17_spill] sm:$0xff] }
 0x302   :  { %v1852_v7 = vmul.f32 %v3953_v6, %v1781_v27  ;;  %v1851_v14 = vmul.f32 %v3954_v29, %v1779_v45  ;;  %v1785_v59 = vmul.f32 %v3512_v3, %v1742_v37  ;;  %v3959_v3 = vld [vmem:[#allocation13_spill] sm:$0xff]  ;;  %v1730_v51 = vmul.f32 %v1714_v52, %v3489_v50  ;;  %1053 = vst.msk [vmem:[#allocation5 + $0x78] sm:$0xff] %vm3961_vm10, %v1037_v34  ;;  %v3966_v56 = vld [vmem:[#allocation12_spill] sm:$0xff]  ;;  %v3972_v19 = vld [vmem:[#allocation10_spill] sm:$0xff] }
 0x303   :  { %v2183_v40 = vpop.eup %2182  ;;  %v1736_v44 = vsub.f32 %v1640_v11, %v1720_v41  ;;  %v1783_v38 = vmul.f32 %v3461_v58, %v1741_v21  ;;  %v1712_v25 = vadd.f32 %v1693_v35, %v3955_v23  ;;  %v1647_v28 = vld [vmem:[#allocation5 + $0x58] sm:$0xff]  ;;  %v1721_v60 = vmul.f32 %v1705_v49, %v3956_v13  ;;  %v3974_v35 = vld [vmem:[#allocation20_spill] sm:$0xff] }
 0x304   :  { %v2185_v5 = vpop.eup %2184  ;;  %1868 = vst.msk [vmem:[%s3658_s4 + $0x40] sm:$0xff] %vm3957_vm12, %v1852_v7  ;;  %v1854_v26 = vmul.f32 %v3959_v3, %v1785_v59  ;;  %v1743_v58 = vsub.f32 %v1647_v28, %v1727_v1  ;;  %v1695_v2 = vmul.f32 0.6931472, %v2183_v40  ;;  %vm1809_vm13 = vcmp.ge.s32.totalorder %v2202_v33, 0  ;;  %v3968_v1 = vld [vmem:[#allocation23_spill] sm:$0xff]  ;;  %v3970_v27 = vld [vmem:[#allocation21_spill] sm:$0xff] }
 0x305   :  { %1867 = vst.msk [vmem:[%s3658_s4 + $0x38] sm:$0xff] %vm3958_vm5, %v1851_v14  ;;  %v2187_v57 = vpop.eup %2186  ;;  %v1773_v20 = vmul.f32 %v3466_v55, %v1736_v44  ;;  %v1853_v18 = vmul.f32 %v3960_v53, %v1783_v38  ;;  %v1728_v12 = vmul.f32 %v1712_v25, %v3482_v46  ;;  %v1737_v36 = vsub.f32 %v1641_v43, %v1721_v60  ;;  %v1648_v55 = vld [vmem:[#allocation5 + $0x60] sm:$0xff]  ;;  %v2203_v21 = vld [vmem:[%s3656_s2 + $0x78] sm:$0xff] }
 0x306   :  { %v2189_v17 = vpop.eup %2188  ;;  %1870 = vst.msk [vmem:[%s3658_s4 + $0x50] sm:$0xff] %vm3962_vm2, %v1854_v26  ;;  %v1787_v62 = vmul.f32 %v3472_v0, %v1743_v58  ;;  %v1650_v46 = vld [vmem:[#allocation5 + $0x70] sm:$0xff]  ;;  %v1713_v50 = vadd.f32 %v1695_v2, %v3963_v4  ;;  %v1715_v54 = vadd.f32 %v1699_v47, %v3966_v56  ;;  %v3967_v24 = vmov 0.0  }
 0x307   :  { %v1848_v30 = vmul.f32 %v3964_v48, %v1773_v20  ;;  %1869 = vst.msk [vmem:[%s3658_s4 + $0x48] sm:$0xff] %vm3965_vm9, %v1853_v18  ;;  %v1744_v8 = vsub.f32 %v1648_v55, %v1728_v12  ;;  %v1746_v15 = vsub.f32 %v1650_v46, %v1730_v51  ;;  %v1943_v32 = vsel %vm1810_vm11, 1.0, %v3967_v24  ;;  %v1649_v22 = vld [vmem:[#allocation5 + $0x68] sm:$0xff]  ;;  %vm3977_vm11 = vmmov %vm3935_vm0 }
 0x308   :  { %v1775_v0 = vmul.f32 %v3968_v1, %v1737_v36  ;;  %v1855_v42 = vmul.f32 %v3969_v16, %v1787_v62  ;;  %v1729_v45 = vmul.f32 %v1713_v50, %v3970_v27  ;;  %v1942_v47 = vsel %vm1809_vm13, 1.0, %v3967_v24 }
 0x309   :  { %1864 = vst.msk [vmem:[%s3658_s4 + $0x20] sm:$0xff] %vm3971_vm3, %v1848_v30  ;;  %v1789_v37 = vmul.f32 %v2187_v57, %v1744_v8  ;;  %v1793_v31 = vmul.f32 %v2189_v17, %v1746_v15  ;;  %vm1811_vm14 = vcmp.ge.s32.totalorder %v2203_v21, 0  ;;  %v1731_v11 = vmul.f32 %v1715_v54, %v3468_v39  ;;  %v1651_v49 = vld [vmem:[#allocation5 + $0x78] sm:$0xff] }
 0x30a   :  { %v1849_v63 = vmul.f32 %v3972_v19, %v1775_v0  ;;  %1871 = vst.msk [vmem:[%s3658_s4 + $0x58] sm:$0xff] %vm3973_vm6, %v1855_v42  ;;  %v1745_v41 = vsub.f32 %v1649_v22, %v1729_v45  ;;  %v1944_v39 = vsel %vm1811_vm14, 1.0, %v3967_v24 }
 0x30b   :  { %v1856_v10 = vmul.f32 %v3974_v35, %v1789_v37  ;;  %v1858_v52 = vmul.f32 %v1943_v32, %v1793_v31  ;;  %v1747_v6 = vsub.f32 %v1651_v49, %v1731_v11 }
 0x30c   :  { %1865 = vst.msk [vmem:[%s3658_s4 + $0x28] sm:$0xff] %vm3975_vm1, %v1849_v63  ;;  %v1791_v61 = vmul.f32 %v3487_v9, %v1745_v41 }
 0x30d   :  { %1872 = vst.msk [vmem:[%s3658_s4 + $0x60] sm:$0xff] %vm3976_vm8, %v1856_v10  ;;  %v1795_v29 = vmul.f32 %v2185_v5, %v1747_v6 }
 0x30e   :  { %1874 = vst.msk [vmem:[%s3658_s4 + $0x70] sm:$0xff] %vm3977_vm11, %v1858_v52  ;;  %v1857_v7 = vmul.f32 %v1942_v47, %v1791_v61 }
 0x30f   :  { %v1859_v9 = vmul.f32 %v1944_v39, %v1795_v29 }
 0x310   :  { %1873 = vst.msk [vmem:[%s3658_s4 + $0x68] sm:$0xff] %vm3978_vm15, %v1857_v7 }
 0x311   :  { %1875 = vst.msk [vmem:[%s3658_s4 + $0x78] sm:$0xff] %vm3979_vm7, %v1859_v9 }

</bundles_post_ra>
